<compile_context>
chip_gen: v5e
topology: v5e:2x2
jax: 0.10.0
libtpu: 0.0.40
codegen_flags: <defaults>
</compile_context>

<pallas_src>
import jax
import jax.numpy as jnp
from jax.experimental import pallas as pl
from jax.experimental.pallas import tpu as pltpu


def _banded_conv(src_ref, m_ref, s_ref, t_ref, rows_out):
    """One Conv3x3(pad=1) + BN + ReLU stage in the 'W folded into lanes' layout.

    src_ref: (P, K)    bf16 padded stack (zero separator rows = H padding)
    m_ref:   (3, K, L) bf16 banded weight matrices (one per ky, W-pad folded in)
    s_ref, t_ref: (1, L) f32 BN scale / shift (conv bias folded into t)
    returns: (rows_out, L) f32 activation, rows_out = P - 2.  Rows that
    straddle two images are junk and are simply never copied out.
    """
    acc = jnp.dot(src_ref[0:rows_out, :], m_ref[0],
                  preferred_element_type=jnp.float32)
    acc += jnp.dot(src_ref[1:rows_out + 1, :], m_ref[1],
                   preferred_element_type=jnp.float32)
    acc += jnp.dot(src_ref[2:rows_out + 2, :], m_ref[2],
                   preferred_element_type=jnp.float32)
    acc = acc * s_ref[...] + t_ref[...]          # BN (bias folded), f32
    return jnp.maximum(acc, 0.0)                 # ReLU, f32


def _conv_block_kernel(x_ref, m1_ref, s1_ref, t1_ref, m2_ref, s2_ref, t2_ref,
                       o_ref, xr_ref, yr_ref):
    # x_ref:  (B_n, H, W*Cin)        bf16 unpadded inputs (B_n images)
    # m1_ref: (3, W*Cin,  W*Cmid)    bf16 banded conv1 weights
    # s1/t1:  (1, W*Cmid)            f32  BN1 scale / shift
    # m2_ref: (3, W*Cmid, W*Cout)    bf16 banded conv2 weights
    # s2/t2:  (1, W*Cout)            f32  BN2 scale / shift
    # o_ref:  (B_n, H, W*Cout)       bf16 lane-dense output
    # xr_ref: (B_n*(H+2), W*Cin)     bf16 scratch: padded stacked inputs
    # yr_ref: (B_n*(H+2), W*Cmid)    bf16 scratch: padded stacked stage-1 act
    bn, H = o_ref.shape[0], o_ref.shape[1]
    rows = bn * (H + 2) - 2

    zx = jnp.zeros((1, xr_ref.shape[1]), xr_ref.dtype)
    zy = jnp.zeros((1, yr_ref.shape[1]), yr_ref.dtype)

    # --- stage 1: stack B_n images with zero separator rows (= H padding) ---
    for b in range(bn):
        base = b * (H + 2)
        xr_ref[base:base + 1, :] = zx
        xr_ref[base + 1:base + 1 + H, :] = x_ref[b]
        xr_ref[base + H + 1:base + H + 2, :] = zx

    act1 = _banded_conv(xr_ref, m1_ref, s1_ref, t1_ref, rows)  # f32
    act1 = act1.astype(yr_ref.dtype)                           # -> bf16 once

    # --- stage 2: intermediate stays in VMEM (never written to HBM) ---
    for b in range(bn):
        base = b * (H + 2)
        yr_ref[base:base + 1, :] = zy
        yr_ref[base + 1:base + 1 + H, :] = act1[base:base + H, :]
        yr_ref[base + H + 1:base + H + 2, :] = zy

    act2 = _banded_conv(yr_ref, m2_ref, s2_ref, t2_ref, rows)  # f32
    for b in range(bn):
        base = b * (H + 2)
        o_ref[b] = act2[base:base + H, :].astype(o_ref.dtype)


def _banded_weights(w_pt, W):
    """PyTorch (Cout, Cin, 3, 3) conv weights -> (3, W*Cin, W*Cout) bands.

    m[ky][(w+kx-1)*Cin + ci, w*Cout + co] = w_pt[co, ci, ky, kx]; entries whose
    source column w+kx-1 is outside [0, W) are omitted, which implements the
    padding=1 zero-padding along W exactly.
    """
    mats = []
    for ky in range(3):
        m = None
        for kx in range(3):
            band = jnp.eye(W, W, k=1 - kx, dtype=jnp.float32)  # [w_src, w_out]
            term = jnp.kron(band, w_pt[:, :, ky, kx].T)         # (W*Cin, W*Cout)
            m = term if m is None else m + term
        mats.append(m)
    return jnp.stack(mats, axis=0)


def make_conv_block_params(key, ch_in, ch_out, W):
    """Deterministic parameters for conv_block(ch_in, ch_out), pre-laid-out."""
    keys = jax.random.split(key, 12)
    eps = 1e-5

    def bn_raw(kg, kb, km, kv, c):
        gamma = 1.0 + 0.1 * jax.random.normal(kg, (c,), jnp.float32)
        beta = 0.1 * jax.random.normal(kb, (c,), jnp.float32)
        mean = 0.1 * jax.random.normal(km, (c,), jnp.float32)
        var = jnp.abs(jax.random.normal(kv, (c,), jnp.float32)) + 0.5
        return gamma, beta, mean, var

    w1_pt = 0.1 * jax.random.normal(keys[0], (ch_out, ch_in, 3, 3), jnp.float32)
    b1 = 0.1 * jax.random.normal(keys[1], (ch_out,), jnp.float32)
    bn1 = bn_raw(keys[2], keys[3], keys[4], keys[5], ch_out)
    w2_pt = 0.1 * jax.random.normal(keys[6], (ch_out, ch_out, 3, 3), jnp.float32)
    b2 = 0.1 * jax.random.normal(keys[7], (ch_out,), jnp.float32)
    bn2 = bn_raw(keys[8], keys[9], keys[10], keys[11], ch_out)

    def fold(bn, bias, c):
        gamma, beta, mean, var = bn
        scale = gamma / jnp.sqrt(var + eps)
        shift = beta + (bias - mean) * scale          # conv bias folded into BN
        # Tile per-channel vectors across W to match the (.., W*C) lane layout.
        return (jnp.tile(scale.reshape(1, c), (1, W)),
                jnp.tile(shift.reshape(1, c), (1, W)))

    s1, t1 = fold(bn1, b1, ch_out)
    s2, t2 = fold(bn2, b2, ch_out)

    return dict(
        m1=_banded_weights(w1_pt, W).astype(jnp.bfloat16),
        m2=_banded_weights(w2_pt, W).astype(jnp.bfloat16),
        s1=s1, t1=t1, s2=s2, t2=t2,
        # raw parameters kept for the reference implementation
        w1_pt=w1_pt, b1=b1, bn1=bn1, w2_pt=w2_pt, b2=b2, bn2=bn2,
    )


def _pick_images_per_step(N, max_bn=8):
    """Largest divisor of N that is <= max_bn while keeping the grid >= 2
    steps (so both v7x TensorCores get work) whenever N >= 2."""
    best = 1
    for c in range(1, min(max_bn, N) + 1):
        if N % c == 0 and (N // c >= 2 or N == 1):
            best = c
    return best


def conv_block_forward(x_nchw, p):
    """Forward pass matching conv_block.forward (eval-mode BN).

    NCHW float32 in, NCHW bfloat16 out (bf16 MXU operands throughout)."""
    N, Cin, H, W = x_nchw.shape
    Cmid = p["s1"].shape[1] // W
    Cout = p["s2"].shape[1] // W
    bn = _pick_images_per_step(N)
    P = bn * (H + 2)

    # NCHW -> NHWC -> fold W into the lane axis (pure reshape); bf16 halves the
    # input HBM read.
    x = jnp.transpose(x_nchw, (0, 2, 3, 1)).reshape(N, H, W * Cin)
    x = x.astype(jnp.bfloat16)

    out = pl.pallas_call(
        _conv_block_kernel,
        out_shape=jax.ShapeDtypeStruct((N, H, W * Cout), jnp.bfloat16),
        grid_spec=pltpu.PrefetchScalarGridSpec(
            num_scalar_prefetch=0,
            grid=(N // bn,),
            in_specs=[
                pl.BlockSpec((bn, H, W * Cin), lambda n: (n, 0, 0)),
                pl.BlockSpec((3, W * Cin, W * Cmid), lambda n: (0, 0, 0)),
                pl.BlockSpec((1, W * Cmid), lambda n: (0, 0)),
                pl.BlockSpec((1, W * Cmid), lambda n: (0, 0)),
                pl.BlockSpec((3, W * Cmid, W * Cout), lambda n: (0, 0, 0)),
                pl.BlockSpec((1, W * Cout), lambda n: (0, 0)),
                pl.BlockSpec((1, W * Cout), lambda n: (0, 0)),
            ],
            out_specs=pl.BlockSpec((bn, H, W * Cout), lambda n: (n, 0, 0)),
            scratch_shapes=[
                pltpu.VMEM((P, W * Cin), jnp.bfloat16),   # padded stacked input
                pltpu.VMEM((P, W * Cmid), jnp.bfloat16),  # padded stage-1 act
            ],
        ),
        compiler_params=pltpu.CompilerParams(
            dimension_semantics=("parallel",),      # image blocks -> both v7x TCs
            vmem_limit_bytes=32 * 1024 * 1024,      # safe on v5e/v6e/v7x
        ),
    )(x, p["m1"], p["s1"], p["t1"], p["m2"], p["s2"], p["t2"])

    out = out.reshape(N, H, W, Cout)
    return jnp.transpose(out, (0, 3, 1, 2))          # NHWC -> NCHW, bf16


def _reference(x_nchw, p):
    """Pure-JAX reference (lax.conv) mirroring the kernel's bf16 MXU operands."""
    eps = 1e-5

    def stage(x, w_pt, b, bn):
        gamma, beta, mean, var = bn
        y = jax.lax.conv_general_dilated(
            x.astype(jnp.bfloat16), w_pt.astype(jnp.bfloat16),
            window_strides=(1, 1), padding=((1, 1), (1, 1)),
            dimension_numbers=("NCHW", "OIHW", "NCHW"),
            preferred_element_type=jnp.float32)
        y = y + b.reshape(1, -1, 1, 1)
        scale = (gamma / jnp.sqrt(var + eps)).reshape(1, -1, 1, 1)
        y = (y - mean.reshape(1, -1, 1, 1)) * scale + beta.reshape(1, -1, 1, 1)
        return jnp.maximum(y, 0.0)

    y = stage(x_nchw, p["w1_pt"], p["b1"], p["bn1"])
    y = stage(y, p["w2_pt"], p["b2"], p["bn2"])
    return y


if __name__ == "__main__":
    key = jax.random.PRNGKey(0)
    kx, kp = jax.random.split(key)

    # N=8 exercises the image-batching path (B_n=4 images/step, 2 grid steps).
    N, CH_IN, CH_OUT, H, W = 8, 4, 8, 16, 16
    x = jax.random.normal(kx, (N, CH_IN, H, W), jnp.float32)
    params = make_conv_block_params(kp, CH_IN, CH_OUT, W)

    out = jax.block_until_ready(conv_block_forward(x, params))
    ref = _reference(x, params)

    assert out.shape == (N, CH_OUT, H, W), out.shape
    assert out.dtype == jnp.bfloat16, out.dtype
    # bf16 MXU operands + bf16 output store -> bf16-level tolerance.
    err = float(jnp.max(jnp.abs(out.astype(jnp.float32) - ref)))
    assert jnp.allclose(out.astype(jnp.float32), ref, atol=2e-2, rtol=2e-2), err

    print("KERNEL_OK")
</pallas_src>

<mosaic_0001>
module attributes {stable_mosaic.version = 11 : i64} {
  func.func @_conv_block_kernel(%arg0: i32, %arg1: memref<4x16x64xbf16, #tpu.memory_space<vmem>>, %arg2: memref<3x64x128xbf16, #tpu.memory_space<vmem>>, %arg3: memref<1x128xf32, #tpu.memory_space<vmem>>, %arg4: memref<1x128xf32, #tpu.memory_space<vmem>>, %arg5: memref<3x128x128xbf16, #tpu.memory_space<vmem>>, %arg6: memref<1x128xf32, #tpu.memory_space<vmem>>, %arg7: memref<1x128xf32, #tpu.memory_space<vmem>>, %arg8: memref<4x16x128xbf16, #tpu.memory_space<vmem>>, %arg9: memref<72x64xbf16, #tpu.memory_space<vmem>>, %arg10: memref<72x128xbf16, #tpu.memory_space<vmem>>) attributes {dimension_semantics = [#tpu.dimension_semantics<parallel>], iteration_bounds = array<i64: 2>, scalar_prefetch = 0 : i64, scratch_operands = 2 : i64, tpu.core_type = #tpu.core_type<tc>, window_params = [{transform_indices = @transform_0, window_bounds = array<i64: 4, 16, 64>}, {pipeline_mode = #tpu.pipeline_mode<synchronous>, transform_indices = @transform_1, window_bounds = array<i64: 3, 64, 128>}, {pipeline_mode = #tpu.pipeline_mode<synchronous>, transform_indices = @transform_2, window_bounds = array<i64: 1, 128>}, {pipeline_mode = #tpu.pipeline_mode<synchronous>, transform_indices = @transform_3, window_bounds = array<i64: 1, 128>}, {pipeline_mode = #tpu.pipeline_mode<synchronous>, transform_indices = @transform_4, window_bounds = array<i64: 3, 128, 128>}, {pipeline_mode = #tpu.pipeline_mode<synchronous>, transform_indices = @transform_5, window_bounds = array<i64: 1, 128>}, {pipeline_mode = #tpu.pipeline_mode<synchronous>, transform_indices = @transform_6, window_bounds = array<i64: 1, 128>}, {transform_indices = @transform_7, window_bounds = array<i64: 4, 16, 128>}]} {
    %cst = arith.constant 0.000000e+00 : bf16
    %0 = vector.broadcast %cst : bf16 to vector<1x64xbf16>
    %cst_0 = arith.constant 0.000000e+00 : bf16
    %1 = vector.broadcast %cst_0 : bf16 to vector<1x128xbf16>
    %c0 = arith.constant 0 : index
    %c0_1 = arith.constant 0 : index
    %2 = vector.load %arg9[%c0, %c0_1] : memref<72x64xbf16, #tpu.memory_space<vmem>>, vector<1x64xbf16>
    tpu.vector_store %arg9[%c0, %c0_1], %0 {strides = array<i32>} : memref<72x64xbf16, #tpu.memory_space<vmem>>, vector<1x64xbf16>,
    %c0_2 = arith.constant 0 : index
    %c0_3 = arith.constant 0 : index
    %c0_4 = arith.constant 0 : index
    %3 = vector.load %arg1[%c0_2, %c0_3, %c0_4] : memref<4x16x64xbf16, #tpu.memory_space<vmem>>, vector<1x16x64xbf16>
    %4 = vector.shape_cast %3 : vector<1x16x64xbf16> to vector<16x64xbf16>
    %c1 = arith.constant 1 : index
    %c0_5 = arith.constant 0 : index
    %5 = vector.load %arg9[%c1, %c0_5] : memref<72x64xbf16, #tpu.memory_space<vmem>>, vector<16x64xbf16>
    tpu.vector_store %arg9[%c1, %c0_5], %4 {strides = array<i32>} : memref<72x64xbf16, #tpu.memory_space<vmem>>, vector<16x64xbf16>,
    %c17 = arith.constant 17 : index
    %c0_6 = arith.constant 0 : index
    %6 = vector.load %arg9[%c17, %c0_6] : memref<72x64xbf16, #tpu.memory_space<vmem>>, vector<1x64xbf16>
    tpu.vector_store %arg9[%c17, %c0_6], %0 {strides = array<i32>} : memref<72x64xbf16, #tpu.memory_space<vmem>>, vector<1x64xbf16>,
    %c18 = arith.constant 18 : index
    %c0_7 = arith.constant 0 : index
    %7 = vector.load %arg9[%c18, %c0_7] : memref<72x64xbf16, #tpu.memory_space<vmem>>, vector<1x64xbf16>
    tpu.vector_store %arg9[%c18, %c0_7], %0 {strides = array<i32>} : memref<72x64xbf16, #tpu.memory_space<vmem>>, vector<1x64xbf16>,
    %c1_8 = arith.constant 1 : index
    %c0_9 = arith.constant 0 : index
    %c0_10 = arith.constant 0 : index
    %8 = vector.load %arg1[%c1_8, %c0_9, %c0_10] : memref<4x16x64xbf16, #tpu.memory_space<vmem>>, vector<1x16x64xbf16>
    %9 = vector.shape_cast %8 : vector<1x16x64xbf16> to vector<16x64xbf16>
    %c19 = arith.constant 19 : index
    %c0_11 = arith.constant 0 : index
    %10 = vector.load %arg9[%c19, %c0_11] : memref<72x64xbf16, #tpu.memory_space<vmem>>, vector<16x64xbf16>
    tpu.vector_store %arg9[%c19, %c0_11], %9 {strides = array<i32>} : memref<72x64xbf16, #tpu.memory_space<vmem>>, vector<16x64xbf16>,
    %c35 = arith.constant 35 : index
    %c0_12 = arith.constant 0 : index
    %11 = vector.load %arg9[%c35, %c0_12] : memref<72x64xbf16, #tpu.memory_space<vmem>>, vector<1x64xbf16>
    tpu.vector_store %arg9[%c35, %c0_12], %0 {strides = array<i32>} : memref<72x64xbf16, #tpu.memory_space<vmem>>, vector<1x64xbf16>,
    %c36 = arith.constant 36 : index
    %c0_13 = arith.constant 0 : index
    %12 = vector.load %arg9[%c36, %c0_13] : memref<72x64xbf16, #tpu.memory_space<vmem>>, vector<1x64xbf16>
    tpu.vector_store %arg9[%c36, %c0_13], %0 {strides = array<i32>} : memref<72x64xbf16, #tpu.memory_space<vmem>>, vector<1x64xbf16>,
    %c2 = arith.constant 2 : index
    %c0_14 = arith.constant 0 : index
    %c0_15 = arith.constant 0 : index
    %13 = vector.load %arg1[%c2, %c0_14, %c0_15] : memref<4x16x64xbf16, #tpu.memory_space<vmem>>, vector<1x16x64xbf16>
    %14 = vector.shape_cast %13 : vector<1x16x64xbf16> to vector<16x64xbf16>
    %c37 = arith.constant 37 : index
    %c0_16 = arith.constant 0 : index
    %15 = vector.load %arg9[%c37, %c0_16] : memref<72x64xbf16, #tpu.memory_space<vmem>>, vector<16x64xbf16>
    tpu.vector_store %arg9[%c37, %c0_16], %14 {strides = array<i32>} : memref<72x64xbf16, #tpu.memory_space<vmem>>, vector<16x64xbf16>,
    %c53 = arith.constant 53 : index
    %c0_17 = arith.constant 0 : index
    %16 = vector.load %arg9[%c53, %c0_17] : memref<72x64xbf16, #tpu.memory_space<vmem>>, vector<1x64xbf16>
    tpu.vector_store %arg9[%c53, %c0_17], %0 {strides = array<i32>} : memref<72x64xbf16, #tpu.memory_space<vmem>>, vector<1x64xbf16>,
    %c54 = arith.constant 54 : index
    %c0_18 = arith.constant 0 : index
    %17 = vector.load %arg9[%c54, %c0_18] : memref<72x64xbf16, #tpu.memory_space<vmem>>, vector<1x64xbf16>
    tpu.vector_store %arg9[%c54, %c0_18], %0 {strides = array<i32>} : memref<72x64xbf16, #tpu.memory_space<vmem>>, vector<1x64xbf16>,
    %c3 = arith.constant 3 : index
    %c0_19 = arith.constant 0 : index
    %c0_20 = arith.constant 0 : index
    %18 = vector.load %arg1[%c3, %c0_19, %c0_20] : memref<4x16x64xbf16, #tpu.memory_space<vmem>>, vector<1x16x64xbf16>
    %19 = vector.shape_cast %18 : vector<1x16x64xbf16> to vector<16x64xbf16>
    %c55 = arith.constant 55 : index
    %c0_21 = arith.constant 0 : index
    %20 = vector.load %arg9[%c55, %c0_21] : memref<72x64xbf16, #tpu.memory_space<vmem>>, vector<16x64xbf16>
    tpu.vector_store %arg9[%c55, %c0_21], %19 {strides = array<i32>} : memref<72x64xbf16, #tpu.memory_space<vmem>>, vector<16x64xbf16>,
    %c71 = arith.constant 71 : index
    %c0_22 = arith.constant 0 : index
    %21 = vector.load %arg9[%c71, %c0_22] : memref<72x64xbf16, #tpu.memory_space<vmem>>, vector<1x64xbf16>
    tpu.vector_store %arg9[%c71, %c0_22], %0 {strides = array<i32>} : memref<72x64xbf16, #tpu.memory_space<vmem>>, vector<1x64xbf16>,
    %c0_23 = arith.constant 0 : index
    %c0_24 = arith.constant 0 : index
    %22 = vector.load %arg9[%c0_23, %c0_24] : memref<72x64xbf16, #tpu.memory_space<vmem>>, vector<70x64xbf16>
    %c0_25 = arith.constant 0 : index
    %c0_26 = arith.constant 0 : index
    %c0_27 = arith.constant 0 : index
    %23 = vector.load %arg2[%c0_25, %c0_26, %c0_27] : memref<3x64x128xbf16, #tpu.memory_space<vmem>>, vector<1x64x128xbf16>
    %24 = vector.shape_cast %23 : vector<1x64x128xbf16> to vector<64x128xbf16>
    %cst_28 = arith.constant dense<0.000000e+00> : vector<70x128xf32>
    %25 = tpu.matmul %22, %24, %cst_28 {dimension_numbers = #tpu.dot_dimension_numbers<[1], [0], [0], [1], [0, 0, 1, 1], [], []>} : vector<70x64xbf16>, vector<64x128xbf16>, vector<70x128xf32> -> vector<70x128xf32>
    %c1_29 = arith.constant 1 : index
    %c0_30 = arith.constant 0 : index
    %26 = vector.load %arg9[%c1_29, %c0_30] : memref<72x64xbf16, #tpu.memory_space<vmem>>, vector<70x64xbf16>
    %c1_31 = arith.constant 1 : index
    %c0_32 = arith.constant 0 : index
    %c0_33 = arith.constant 0 : index
    %27 = vector.load %arg2[%c1_31, %c0_32, %c0_33] : memref<3x64x128xbf16, #tpu.memory_space<vmem>>, vector<1x64x128xbf16>
    %28 = vector.shape_cast %27 : vector<1x64x128xbf16> to vector<64x128xbf16>
    %cst_34 = arith.constant dense<0.000000e+00> : vector<70x128xf32>
    %29 = tpu.matmul %26, %28, %cst_34 {dimension_numbers = #tpu.dot_dimension_numbers<[1], [0], [0], [1], [0, 0, 1, 1], [], []>} : vector<70x64xbf16>, vector<64x128xbf16>, vector<70x128xf32> -> vector<70x128xf32>
    %30 = arith.addf %25, %29 : vector<70x128xf32>
    %c2_35 = arith.constant 2 : index
    %c0_36 = arith.constant 0 : index
    %31 = vector.load %arg9[%c2_35, %c0_36] : memref<72x64xbf16, #tpu.memory_space<vmem>>, vector<70x64xbf16>
    %c2_37 = arith.constant 2 : index
    %c0_38 = arith.constant 0 : index
    %c0_39 = arith.constant 0 : index
    %32 = vector.load %arg2[%c2_37, %c0_38, %c0_39] : memref<3x64x128xbf16, #tpu.memory_space<vmem>>, vector<1x64x128xbf16>
    %33 = vector.shape_cast %32 : vector<1x64x128xbf16> to vector<64x128xbf16>
    %cst_40 = arith.constant dense<0.000000e+00> : vector<70x128xf32>
    %34 = tpu.matmul %31, %33, %cst_40 {dimension_numbers = #tpu.dot_dimension_numbers<[1], [0], [0], [1], [0, 0, 1, 1], [], []>} : vector<70x64xbf16>, vector<64x128xbf16>, vector<70x128xf32> -> vector<70x128xf32>
    %35 = arith.addf %30, %34 : vector<70x128xf32>
    %c0_41 = arith.constant 0 : index
    %c0_42 = arith.constant 0 : index
    %36 = vector.load %arg3[%c0_41, %c0_42] : memref<1x128xf32, #tpu.memory_space<vmem>>, vector<1x128xf32>
    %37 = vector.broadcast %36 : vector<1x128xf32> to vector<70x128xf32>
    %38 = arith.mulf %35, %37 : vector<70x128xf32>
    %c0_43 = arith.constant 0 : index
    %c0_44 = arith.constant 0 : index
    %39 = vector.load %arg4[%c0_43, %c0_44] : memref<1x128xf32, #tpu.memory_space<vmem>>, vector<1x128xf32>
    %40 = vector.broadcast %39 : vector<1x128xf32> to vector<70x128xf32>
    %41 = arith.addf %38, %40 : vector<70x128xf32>
    %cst_45 = arith.constant 0.000000e+00 : f32
    %42 = vector.broadcast %cst_45 : f32 to vector<70x128xf32>
    %43 = arith.maximumf %41, %42 : vector<70x128xf32>
    %44 = arith.truncf %43 : vector<70x128xf32> to vector<70x128xbf16>
    %c0_46 = arith.constant 0 : index
    %c0_47 = arith.constant 0 : index
    %45 = vector.load %arg10[%c0_46, %c0_47] : memref<72x128xbf16, #tpu.memory_space<vmem>>, vector<1x128xbf16>
    tpu.vector_store %arg10[%c0_46, %c0_47], %1 {strides = array<i32>} : memref<72x128xbf16, #tpu.memory_space<vmem>>, vector<1x128xbf16>,
    %46 = vector.extract_strided_slice %44 {offsets = [0, 0], sizes = [16, 128], strides = [1, 1]} : vector<70x128xbf16> to vector<16x128xbf16>
    %c1_48 = arith.constant 1 : index
    %c0_49 = arith.constant 0 : index
    %47 = vector.load %arg10[%c1_48, %c0_49] : memref<72x128xbf16, #tpu.memory_space<vmem>>, vector<16x128xbf16>
    tpu.vector_store %arg10[%c1_48, %c0_49], %46 {strides = array<i32>} : memref<72x128xbf16, #tpu.memory_space<vmem>>, vector<16x128xbf16>,
    %c17_50 = arith.constant 17 : index
    %c0_51 = arith.constant 0 : index
    %48 = vector.load %arg10[%c17_50, %c0_51] : memref<72x128xbf16, #tpu.memory_space<vmem>>, vector<1x128xbf16>
    tpu.vector_store %arg10[%c17_50, %c0_51], %1 {strides = array<i32>} : memref<72x128xbf16, #tpu.memory_space<vmem>>, vector<1x128xbf16>,
    %c18_52 = arith.constant 18 : index
    %c0_53 = arith.constant 0 : index
    %49 = vector.load %arg10[%c18_52, %c0_53] : memref<72x128xbf16, #tpu.memory_space<vmem>>, vector<1x128xbf16>
    tpu.vector_store %arg10[%c18_52, %c0_53], %1 {strides = array<i32>} : memref<72x128xbf16, #tpu.memory_space<vmem>>, vector<1x128xbf16>,
    %50 = vector.extract_strided_slice %44 {offsets = [18, 0], sizes = [16, 128], strides = [1, 1]} : vector<70x128xbf16> to vector<16x128xbf16>
    %c19_54 = arith.constant 19 : index
    %c0_55 = arith.constant 0 : index
    %51 = vector.load %arg10[%c19_54, %c0_55] : memref<72x128xbf16, #tpu.memory_space<vmem>>, vector<16x128xbf16>
    tpu.vector_store %arg10[%c19_54, %c0_55], %50 {strides = array<i32>} : memref<72x128xbf16, #tpu.memory_space<vmem>>, vector<16x128xbf16>,
    %c35_56 = arith.constant 35 : index
    %c0_57 = arith.constant 0 : index
    %52 = vector.load %arg10[%c35_56, %c0_57] : memref<72x128xbf16, #tpu.memory_space<vmem>>, vector<1x128xbf16>
    tpu.vector_store %arg10[%c35_56, %c0_57], %1 {strides = array<i32>} : memref<72x128xbf16, #tpu.memory_space<vmem>>, vector<1x128xbf16>,
    %c36_58 = arith.constant 36 : index
    %c0_59 = arith.constant 0 : index
    %53 = vector.load %arg10[%c36_58, %c0_59] : memref<72x128xbf16, #tpu.memory_space<vmem>>, vector<1x128xbf16>
    tpu.vector_store %arg10[%c36_58, %c0_59], %1 {strides = array<i32>} : memref<72x128xbf16, #tpu.memory_space<vmem>>, vector<1x128xbf16>,
    %54 = vector.extract_strided_slice %44 {offsets = [36, 0], sizes = [16, 128], strides = [1, 1]} : vector<70x128xbf16> to vector<16x128xbf16>
    %c37_60 = arith.constant 37 : index
    %c0_61 = arith.constant 0 : index
    %55 = vector.load %arg10[%c37_60, %c0_61] : memref<72x128xbf16, #tpu.memory_space<vmem>>, vector<16x128xbf16>
    tpu.vector_store %arg10[%c37_60, %c0_61], %54 {strides = array<i32>} : memref<72x128xbf16, #tpu.memory_space<vmem>>, vector<16x128xbf16>,
    %c53_62 = arith.constant 53 : index
    %c0_63 = arith.constant 0 : index
    %56 = vector.load %arg10[%c53_62, %c0_63] : memref<72x128xbf16, #tpu.memory_space<vmem>>, vector<1x128xbf16>
    tpu.vector_store %arg10[%c53_62, %c0_63], %1 {strides = array<i32>} : memref<72x128xbf16, #tpu.memory_space<vmem>>, vector<1x128xbf16>,
    %c54_64 = arith.constant 54 : index
    %c0_65 = arith.constant 0 : index
    %57 = vector.load %arg10[%c54_64, %c0_65] : memref<72x128xbf16, #tpu.memory_space<vmem>>, vector<1x128xbf16>
    tpu.vector_store %arg10[%c54_64, %c0_65], %1 {strides = array<i32>} : memref<72x128xbf16, #tpu.memory_space<vmem>>, vector<1x128xbf16>,
    %58 = vector.extract_strided_slice %44 {offsets = [54, 0], sizes = [16, 128], strides = [1, 1]} : vector<70x128xbf16> to vector<16x128xbf16>
    %c55_66 = arith.constant 55 : index
    %c0_67 = arith.constant 0 : index
    %59 = vector.load %arg10[%c55_66, %c0_67] : memref<72x128xbf16, #tpu.memory_space<vmem>>, vector<16x128xbf16>
    tpu.vector_store %arg10[%c55_66, %c0_67], %58 {strides = array<i32>} : memref<72x128xbf16, #tpu.memory_space<vmem>>, vector<16x128xbf16>,
    %c71_68 = arith.constant 71 : index
    %c0_69 = arith.constant 0 : index
    %60 = vector.load %arg10[%c71_68, %c0_69] : memref<72x128xbf16, #tpu.memory_space<vmem>>, vector<1x128xbf16>
    tpu.vector_store %arg10[%c71_68, %c0_69], %1 {strides = array<i32>} : memref<72x128xbf16, #tpu.memory_space<vmem>>, vector<1x128xbf16>,
    %c0_70 = arith.constant 0 : index
    %c0_71 = arith.constant 0 : index
    %61 = vector.load %arg10[%c0_70, %c0_71] : memref<72x128xbf16, #tpu.memory_space<vmem>>, vector<70x128xbf16>
    %c0_72 = arith.constant 0 : index
    %c0_73 = arith.constant 0 : index
    %c0_74 = arith.constant 0 : index
    %62 = vector.load %arg5[%c0_72, %c0_73, %c0_74] : memref<3x128x128xbf16, #tpu.memory_space<vmem>>, vector<1x128x128xbf16>
    %63 = vector.shape_cast %62 : vector<1x128x128xbf16> to vector<128x128xbf16>
    %cst_75 = arith.constant dense<0.000000e+00> : vector<70x128xf32>
    %64 = tpu.matmul %61, %63, %cst_75 {dimension_numbers = #tpu.dot_dimension_numbers<[1], [0], [0], [1], [0, 0, 1, 1], [], []>} : vector<70x128xbf16>, vector<128x128xbf16>, vector<70x128xf32> -> vector<70x128xf32>
    %c1_76 = arith.constant 1 : index
    %c0_77 = arith.constant 0 : index
    %65 = vector.load %arg10[%c1_76, %c0_77] : memref<72x128xbf16, #tpu.memory_space<vmem>>, vector<70x128xbf16>
    %c1_78 = arith.constant 1 : index
    %c0_79 = arith.constant 0 : index
    %c0_80 = arith.constant 0 : index
    %66 = vector.load %arg5[%c1_78, %c0_79, %c0_80] : memref<3x128x128xbf16, #tpu.memory_space<vmem>>, vector<1x128x128xbf16>
    %67 = vector.shape_cast %66 : vector<1x128x128xbf16> to vector<128x128xbf16>
    %cst_81 = arith.constant dense<0.000000e+00> : vector<70x128xf32>
    %68 = tpu.matmul %65, %67, %cst_81 {dimension_numbers = #tpu.dot_dimension_numbers<[1], [0], [0], [1], [0, 0, 1, 1], [], []>} : vector<70x128xbf16>, vector<128x128xbf16>, vector<70x128xf32> -> vector<70x128xf32>
    %69 = arith.addf %64, %68 : vector<70x128xf32>
    %c2_82 = arith.constant 2 : index
    %c0_83 = arith.constant 0 : index
    %70 = vector.load %arg10[%c2_82, %c0_83] : memref<72x128xbf16, #tpu.memory_space<vmem>>, vector<70x128xbf16>
    %c2_84 = arith.constant 2 : index
    %c0_85 = arith.constant 0 : index
    %c0_86 = arith.constant 0 : index
    %71 = vector.load %arg5[%c2_84, %c0_85, %c0_86] : memref<3x128x128xbf16, #tpu.memory_space<vmem>>, vector<1x128x128xbf16>
    %72 = vector.shape_cast %71 : vector<1x128x128xbf16> to vector<128x128xbf16>
    %cst_87 = arith.constant dense<0.000000e+00> : vector<70x128xf32>
    %73 = tpu.matmul %70, %72, %cst_87 {dimension_numbers = #tpu.dot_dimension_numbers<[1], [0], [0], [1], [0, 0, 1, 1], [], []>} : vector<70x128xbf16>, vector<128x128xbf16>, vector<70x128xf32> -> vector<70x128xf32>
    %74 = arith.addf %69, %73 : vector<70x128xf32>
    %c0_88 = arith.constant 0 : index
    %c0_89 = arith.constant 0 : index
    %75 = vector.load %arg6[%c0_88, %c0_89] : memref<1x128xf32, #tpu.memory_space<vmem>>, vector<1x128xf32>
    %76 = vector.broadcast %75 : vector<1x128xf32> to vector<70x128xf32>
    %77 = arith.mulf %74, %76 : vector<70x128xf32>
    %c0_90 = arith.constant 0 : index
    %c0_91 = arith.constant 0 : index
    %78 = vector.load %arg7[%c0_90, %c0_91] : memref<1x128xf32, #tpu.memory_space<vmem>>, vector<1x128xf32>
    %79 = vector.broadcast %78 : vector<1x128xf32> to vector<70x128xf32>
    %80 = arith.addf %77, %79 : vector<70x128xf32>
    %cst_92 = arith.constant 0.000000e+00 : f32
    %81 = vector.broadcast %cst_92 : f32 to vector<70x128xf32>
    %82 = arith.maximumf %80, %81 : vector<70x128xf32>
    %83 = vector.extract_strided_slice %82 {offsets = [0, 0], sizes = [16, 128], strides = [1, 1]} : vector<70x128xf32> to vector<16x128xf32>
    %84 = arith.truncf %83 : vector<16x128xf32> to vector<16x128xbf16>
    %c0_93 = arith.constant 0 : index
    %c0_94 = arith.constant 0 : index
    %c0_95 = arith.constant 0 : index
    %85 = vector.load %arg8[%c0_93, %c0_94, %c0_95] : memref<4x16x128xbf16, #tpu.memory_space<vmem>>, vector<1x16x128xbf16>
    %86 = vector.shape_cast %85 : vector<1x16x128xbf16> to vector<16x128xbf16>
    %87 = vector.shape_cast %84 : vector<16x128xbf16> to vector<1x16x128xbf16>
    tpu.vector_store %arg8[%c0_93, %c0_94, %c0_95], %87 {strides = array<i32>} : memref<4x16x128xbf16, #tpu.memory_space<vmem>>, vector<1x16x128xbf16>,
    %88 = vector.extract_strided_slice %82 {offsets = [18, 0], sizes = [16, 128], strides = [1, 1]} : vector<70x128xf32> to vector<16x128xf32>
    %89 = arith.truncf %88 : vector<16x128xf32> to vector<16x128xbf16>
    %c1_96 = arith.constant 1 : index
    %c0_97 = arith.constant 0 : index
    %c0_98 = arith.constant 0 : index
    %90 = vector.load %arg8[%c1_96, %c0_97, %c0_98] : memref<4x16x128xbf16, #tpu.memory_space<vmem>>, vector<1x16x128xbf16>
    %91 = vector.shape_cast %90 : vector<1x16x128xbf16> to vector<16x128xbf16>
    %92 = vector.shape_cast %89 : vector<16x128xbf16> to vector<1x16x128xbf16>
    tpu.vector_store %arg8[%c1_96, %c0_97, %c0_98], %92 {strides = array<i32>} : memref<4x16x128xbf16, #tpu.memory_space<vmem>>, vector<1x16x128xbf16>,
    %93 = vector.extract_strided_slice %82 {offsets = [36, 0], sizes = [16, 128], strides = [1, 1]} : vector<70x128xf32> to vector<16x128xf32>
    %94 = arith.truncf %93 : vector<16x128xf32> to vector<16x128xbf16>
    %c2_99 = arith.constant 2 : index
    %c0_100 = arith.constant 0 : index
    %c0_101 = arith.constant 0 : index
    %95 = vector.load %arg8[%c2_99, %c0_100, %c0_101] : memref<4x16x128xbf16, #tpu.memory_space<vmem>>, vector<1x16x128xbf16>
    %96 = vector.shape_cast %95 : vector<1x16x128xbf16> to vector<16x128xbf16>
    %97 = vector.shape_cast %94 : vector<16x128xbf16> to vector<1x16x128xbf16>
    tpu.vector_store %arg8[%c2_99, %c0_100, %c0_101], %97 {strides = array<i32>} : memref<4x16x128xbf16, #tpu.memory_space<vmem>>, vector<1x16x128xbf16>,
    %98 = vector.extract_strided_slice %82 {offsets = [54, 0], sizes = [16, 128], strides = [1, 1]} : vector<70x128xf32> to vector<16x128xf32>
    %99 = arith.truncf %98 : vector<16x128xf32> to vector<16x128xbf16>
    %c3_102 = arith.constant 3 : index
    %c0_103 = arith.constant 0 : index
    %c0_104 = arith.constant 0 : index
    %100 = vector.load %arg8[%c3_102, %c0_103, %c0_104] : memref<4x16x128xbf16, #tpu.memory_space<vmem>>, vector<1x16x128xbf16>
    %101 = vector.shape_cast %100 : vector<1x16x128xbf16> to vector<16x128xbf16>
    %102 = vector.shape_cast %99 : vector<16x128xbf16> to vector<1x16x128xbf16>
    tpu.vector_store %arg8[%c3_102, %c0_103, %c0_104], %102 {strides = array<i32>} : memref<4x16x128xbf16, #tpu.memory_space<vmem>>, vector<1x16x128xbf16>,
    return
  }
  func.func @transform_0(%arg0: i32) -> (i32, i32, i32) {
    %c0_i32 = arith.constant 0 : i32
    %c0_i32_0 = arith.constant 0 : i32
    %c0_i32_1 = arith.constant 0 : i32
    return %arg0, %c0_i32, %c0_i32_0 : i32, i32, i32
  }
  func.func @transform_1(%arg0: i32) -> (i32, i32, i32) {
    %c0_i32 = arith.constant 0 : i32
    %c0_i32_0 = arith.constant 0 : i32
    %c0_i32_1 = arith.constant 0 : i32
    %c0_i32_2 = arith.constant 0 : i32
    return %c0_i32, %c0_i32_0, %c0_i32_1 : i32, i32, i32
  }
  func.func @transform_2(%arg0: i32) -> (i32, i32) {
    %c0_i32 = arith.constant 0 : i32
    %c0_i32_0 = arith.constant 0 : i32
    %c0_i32_1 = arith.constant 0 : i32
    return %c0_i32, %c0_i32_0 : i32, i32
  }
  func.func @transform_3(%arg0: i32) -> (i32, i32) {
    %c0_i32 = arith.constant 0 : i32
    %c0_i32_0 = arith.constant 0 : i32
    %c0_i32_1 = arith.constant 0 : i32
    return %c0_i32, %c0_i32_0 : i32, i32
  }
  func.func @transform_4(%arg0: i32) -> (i32, i32, i32) {
    %c0_i32 = arith.constant 0 : i32
    %c0_i32_0 = arith.constant 0 : i32
    %c0_i32_1 = arith.constant 0 : i32
    %c0_i32_2 = arith.constant 0 : i32
    return %c0_i32, %c0_i32_0, %c0_i32_1 : i32, i32, i32
  }
  func.func @transform_5(%arg0: i32) -> (i32, i32) {
    %c0_i32 = arith.constant 0 : i32
    %c0_i32_0 = arith.constant 0 : i32
    %c0_i32_1 = arith.constant 0 : i32
    return %c0_i32, %c0_i32_0 : i32, i32
  }
  func.func @transform_6(%arg0: i32) -> (i32, i32) {
    %c0_i32 = arith.constant 0 : i32
    %c0_i32_0 = arith.constant 0 : i32
    %c0_i32_1 = arith.constant 0 : i32
    return %c0_i32, %c0_i32_0 : i32, i32
  }
  func.func @transform_7(%arg0: i32) -> (i32, i32, i32) {
    %c0_i32 = arith.constant 0 : i32
    %c0_i32_0 = arith.constant 0 : i32
    %c0_i32_1 = arith.constant 0 : i32
    return %arg0, %c0_i32, %c0_i32_0 : i32, i32, i32
  }
}

</mosaic_0001>

<bundles_post_ra>
// kernel: tpu_custom_call.1
= control target key start
LH: loop header
LB: loop body
LE: loop exit
PB: predicated region body
PF: predicated region fallthrough
CT: control target
= control target key end

     0   :  { %s2744_s0 = inlined_call_operand.hbm [shape: bf16[8,16,64], index: 0, kind: input, shape index: {}]   ;;  %s2745_s1 = inlined_call_operand.hbm [shape: bf16[3,64,128], index: 1, kind: input, shape index: {}]   ;;  %s2746_s2 = inlined_call_operand.vmem [shape: f32[1,128], index: 2, kind: input, shape index: {}]   ;;  %s2747_s3 = inlined_call_operand.vmem [shape: f32[1,128], index: 3, kind: input, shape index: {}]   ;;  %s2748_s4 = inlined_call_operand.hbm [shape: bf16[3,128,128], index: 4, kind: input, shape index: {}]   ;;  %s2749_s5 = inlined_call_operand.vmem [shape: f32[1,128], index: 5, kind: input, shape index: {}]   ;;  %s2750_s6 = inlined_call_operand.vmem [shape: f32[1,128], index: 6, kind: input, shape index: {}]   ;;  %s2751_s7 = inlined_call_operand.hbm [shape: bf16[8,16,128], index: 7, kind: output, shape index: {}]  }
   0x1   :  { %2757 = sst [smem:[#allocation14_spill]] %s2745_s1 }
   0x2   :  { %12 = vsyncpa [#allocation5], 0 }
   0x3   :  { %14 = vsyncpa [#allocation5 + $0x1], 0 }
   0x4   :  { %15 = vsyncpa [#allocation8], 0 }
   0x5   :  { %16 = vsyncpa [#allocation6], 0 }
   0x6   :  { %18 = vsyncpa [#allocation6 + $0x1], 0  ;;  %s2255_s24 = smov 0   ;;  %s2257_s25 = smov 0  }
   0x7   :  { %s2259_s26 = smov 0   ;;  %s2261_s27 = smov 0  }
   0x8 LB: > { %s2276_s28 = sadd.s32 4294967295, %s2207_s27   ;;  %s1681_s29 = sadd.s32 4294967294, %s2207_s27   ;;  %s2207_s27 = sphi %s2261_s27, %s2805_s27   ;;  %s2203_s26 = sphi %s2259_s26, %s2804_s26   ;;  %s2199_s25 = sphi %s2257_s25, %s2803_s25   ;;  %s2195_s24 = sphi %s2255_s24, %s2802_s24  }
   0x9   : > { %p44_p0 = scmp.ne.s32.totalorder %s2199_s25, %s2195_s24  ;;  %p45_p1 = scmp.eq.s32.totalorder %s2276_s28, 0 }
   0xa   : > { %p194_p2 = scmp.eq.s32.totalorder %s2276_s28, 1  ;;  %p200_p3 = scmp.eq.s32.totalorder %s1681_s29, 1 }
   0xb   : > { %p2285_p4 = por %p45_p1, %p44_p0  ;;  %p1682_p5 = scmp.ge.s32.totalorder %s2207_s27, 1 }
   0xc   : > { %p2290_p6 = por %p200_p3, %p44_p0  ;;  %p207_p7 = scmp.lt.s32.totalorder %s2207_s27, 3 }
   0xd   : > { %s2760_s1 = sld [smem:[#allocation14_spill]]  ;;  %s2209_s13 = smov [#allocation7]  }
   0xe   : > { %p2298_p8 = pnand %p1682_p5, %p207_p7  ;;  %s220_s14 = sshll.u32 %s2209_s13, 4  ;;  %s221_s14 = int_to_ptr.vmem [resolvable:$true] %s220_s14 }
   0xf   : > { %s238_s17 = sshll.u32 %s2748_s4, 4  ;;  %s2752_s18 = smov 64   ;;  %s239_s17 = int_to_ptr.hbm [resolvable:$true] %s238_s17 }
  0x10   : > { %p1984_p9 = pneg %p2298_p8  ;;  %s2753_s19 = smov 4  }
  0x11   : > { %s2212_s20 = smov [#allocation9]   ;;  %s2317_s22 = sadd.s32 1, %s2207_s27  }
  0x12   : > { %p1985_p10 = pnand %p1984_p9, %p45_p1  ;;  %s240_s21 = sshll.u32 %s2212_s20, 4  ;;  %s241_s21 = int_to_ptr.vmem [resolvable:$true] %s240_s21 }
  0x13   : > { %s218_s11 = sshll.u32 %s2760_s1, 4  ;;  %s31_s23 = sadd.s32 1, %s2203_s26  ;;  %s219_s11 = int_to_ptr.hbm [resolvable:$true] %s218_s11 }
  0x14   : > { %1987 = dma.hbm_to_vmem [thread:$0]  (!%p1985_p10), %s219_s11, 1536, %s221_s14, [#allocation8], %s2752_s18, %s2752_s18, %s2753_s19  }
  0x15   : > { %1990 = dma.hbm_to_vmem [thread:$0]  (!%p1985_p10), %s239_s17, 3072, %s241_s21, [#allocation8], %s2752_s18, %s2752_s18, %s2753_s19  }
  0x16   : > { %s28_s29 = ssub.s32 %s2207_s27, %s2317_s22  ;;  %p38_p12 = scmp.ne.s32.totalorder %s2203_s26, %s2199_s25 }
  0x17   : > { %p29_p13 = scmp.eq.s32.totalorder %s28_s29, 0  ;;  %p39_p0 = scmp.eq.s32.totalorder %s2207_s27, 0 }
  0x18   : > { %p2327_p3 = por %p194_p2, %p38_p12  ;;  %p2001_p5 = scmp.lt.s32.totalorder %s2207_s27, 2 }
  0x19   : > { %s2333_s10 = scalar_select %p29_p13, %s2203_s26, %s31_s23  }
  0x1a   : > { %p40_p7 = por %p39_p0, %p38_p12  ;;  %s260_s11 = sand.u32 1, %s2203_s26  }
  0x1b   : > { %s1686_s13 = sshll.u32 %s260_s11, 5  ;;  %s1900_s14 = sshll.u32 %s2207_s27, 5 }
  0x1c   : > { %s270_s17 = scalar_lea.hbm %s2744_s0, %s1900_s14  ;;  %s264_s20 = scalar_lea.vmem [#allocation4], %s1686_s13 }
  0x1d   : > { %s273_s21 = sshll.u32 %s264_s20, 4  ;;  %s271_s29 = sshll.u32 %s270_s17, 4  ;;  %s274_s21 = int_to_ptr.vmem [resolvable:$true] %s273_s21  ;;  %s272_s29 = int_to_ptr.hbm [resolvable:$true] %s271_s29 }
  0x1e   : > { %p2340_p2 = pnand %p2001_p5, %p40_p7  ;;  %s261_s23 = scalar_lea.sflag [#allocation5], %s260_s11 }
  0x1f   : > { %s2107_s19 = sshra.s32 %s272_s29, 4  ;;  %s2114_s15 = scalar_lea.hbm %s2744_s0, 64  ;;  %s2108_s19 = int_to_ptr.hbm [resolvable:$true] %s2107_s19 }
  0x20   : > { %s2109_s1 = scalar_lea.hbm %s2108_s19, 32  ;;  %p2111_p10 = pneg %p2340_p2 }
  0x21   : > { %p2110_p9 = scmp.ne.s32.totalorder %s2108_s19, %s2109_s1  ;;  %p2115_p0 = scmp.lt.s32.totalorder %s2108_s19, %s2744_s0 }
  0x22   : > { %p2116_p5 = scmp.lt.s32.totalorder %s2114_s15, %s2109_s1 }
  0x23   : > { %p2112_p12 = pnand %p2111_p10, %p2110_p9 }
  0x24   : > { %p2117_p7 = por %p2116_p5, %p2115_p0 }
  0x25   : > { %p2113_p13 = pneg %p2112_p12 }
  0x27   : > { %p2118_p11 = pnand %p2117_p7, %p2113_p13 }
  0x29   : > { %2121 = shalt.err (!%p2118_p11)
}
  0x2a   : > { %s2764_s11 = smov 4   ;;  %s2765_s20 = smov 64  }
  0x2b   : > { %1994 = dma.hbm_to_vmem [thread:$0]  (!%p2340_p2), %s272_s29, 512, %s274_s21, %s261_s23, %s2765_s20, %s2765_s20, %s2764_s11  }
  0x2c   : > { %285 = sbr.rel (%p2298_p8) target bundleno = 547 (0x223), region = 48  ;;  %s2360_s14 = sand.u32 (!%p2298_p8), 1, %s2199_s25  }
  0x2d   : > { %s1691_s1 = sshll.u32 (!%p2298_p8), %s2360_s14, 5  ;;  %s288_s19 = scalar_lea.sflag (!%p2298_p8), [#allocation5], %s2360_s14 }
  0x2e   : > { %s2366_s13 = scalar_lea.vmem (!%p2298_p8), [#allocation4], %s1691_s1 }
  0x31   : > { %2182 = dma.done.wait (%p2285_p4), %s288_s19, 512  }
  0x32   : > { %2184 = vsyncadd (%p2285_p4), %s288_s19, 4294966784 }
  0x33   : > { %2186 = dma.done.wait (%p45_p1), [#allocation8], 4608  }
  0x34   : > { %2188 = vsyncadd (%p45_p1), [#allocation8], 4294962688  ;;  %vm430_vm0 = vcmask 518146   ;;  %vm431_vm1 = vsmask.f32 2304  ;;  %v1911_v0 = vld [vmem:[#allocation7 + $0x38] sm:$0xff] }
  0x35   : > { %vm382_vm2 = vsmask.f32 1280  ;;  %v1907_v1 = vld [vmem:[#allocation7 + $0x18] sm:$0xff]  ;;  %vm421_vm3 = vcmask 517120   ;;  %vm439_vm4 = vsmask.f32 6416  ;;  %vm2378_vm5 = vmand %vm430_vm0, %vm431_vm1  ;;  %1964 = vmatpush.bf16.msra.mxu2 %v1911_v0  ;;  %659 = vmatpush.bf16.msra.mxu0 %v1911_v0 }
  0x36   : > { %vm463_vm6 = vcmask 519170   ;;  %vm2755_vm7 = vsmask.f32 7946  ;;  %vm470_vm8 = vcmask 518144   ;;  %vm479_vm9 = vcmask 519171   ;;  %1968 = vmatpush.bf16.msra.mxu3 %v1907_v1  ;;  %v1910_v3 = vld [vmem:[#allocation7 + $0x30] sm:$0xff]  ;;  %730 = vmatpush.bf16.msra.mxu1 %v1907_v1  ;;  %vm2400_vm15 = vmand %vm421_vm3, %vm382_vm2 }
  0x37   : > { %v1906_v4 = vld [vmem:[#allocation7 + $0x10] sm:$0xff]  ;;  %v1696_v5 = vld [vmem:[%s2366_s13 + $0xc] sm:$0xf]  ;;  %vm2756_vm10 = vsmask.f32 3328  ;;  %vm366_vm13 = vcmask 519168   ;;  %vm2414_vm3 = vmand %vm463_vm6, %vm2755_vm7 }
  0x38   : > { %v402_v6 = vshrl.u32 %v1696_v5, 16  ;;  %v405_v7 = vshll.u32 %v1696_v5, 16  ;;  %v433_v8 = vld [vmem:[#allocation2 + $0x10] sm:$0x4]  ;;  %vm488_vm11 = vsmask.f32 7440  ;;  %vm2389_vm14 = vmand %vm479_vm9, %vm2756_vm10 }
  0x39   : > { %vm2754_vm12 = vsmask.f32 7950  ;;  %v1909_v9 = vld [vmem:[#allocation7 + $0x28] sm:$0xff]  ;;  %v434_v11 = vsel %vm2378_vm5, 0, %v433_v8  ;;  %v1697_v12 = vld [vmem:[%s2366_s13 + $0x10] sm:$0xf]  ;;  %1965 = vmatpush.bf16.msra.mxu2 %v1910_v3  ;;  %660 = vmatpush.bf16.msra.mxu0 %v1910_v3  ;;  %vm2408_vm5 = vmor %vm431_vm1, %vm439_vm4 }
  0x3a   : > { %v1905_v10 = vld [vmem:[#allocation7 + $0x8] sm:$0xff]  ;;  %v1698_v13 = vld [vmem:[%s2366_s13 + $0x14] sm:$0xf]  ;;  %v404_v14 = vrot.slane %v402_v6, 6  ;;  %v407_v15 = vrot.slane %v405_v7, 7  ;;  %v442_v16 = vshrl.u32 %v1697_v12, 16  ;;  %1969 = vmatpush.bf16.msra.mxu3 %v1906_v4  ;;  %731 = vmatpush.bf16.msra.mxu1 %v1906_v4  ;;  %vm2422_vm4 = vmand %vm470_vm8, %vm431_vm1 }
  0x3b   : > { %435 = vst [vmem:[#allocation2 + $0x10] sm:$0x4] %v434_v11  ;;  %v445_v17 = vshll.u32 %v1697_v12, 16  ;;  %v423_v19 = vld [vmem:[#allocation2 + $0x10] sm:$0x3]  ;;  %v451_v20 = vshrl.u32 %v1698_v13, 16  ;;  %vm2432_vm6 = vmand %vm479_vm9, %vm2754_vm12 }
  0x3c   : > { %v454_v21 = vshll.u32 %v1698_v13, 16  ;;  %v482_v22 = vld [vmem:[#allocation2 + $0x18] sm:$0x8]  ;;  %v2393_v23 = vor.u32 %v407_v15, %v404_v14  ;;  %v444_v24 = vrot.slane %v442_v16, 5  ;;  %v1699_v27 = vld [vmem:[%s2366_s13 + $0x18] sm:$0xf]  ;;  %vm518_vm9 = vmand %vm366_vm13, %vm2756_vm10 }
  0x3d   : > { %v447_v25 = vrot.slane %v445_v17, 6  ;;  %v483_v26 = vsel %vm2389_vm14, 0, %v482_v22  ;;  %v453_v29 = vrot.slane %v451_v20, 5  ;;  %v1700_v31 = vld [vmem:[%s2366_s13 + $0x1c] sm:$0xf]  ;;  %v1908_v32 = vld [vmem:[#allocation7 + $0x20] sm:$0xff]  ;;  %1966 = vmatpush.bf16.msra.mxu2 %v1909_v9  ;;  %661 = vmatpush.bf16.msra.mxu0 %v1909_v9 }
  0x3e   : > { %v456_v30 = vrot.slane %v454_v21, 6  ;;  %484 = vst [vmem:[#allocation2 + $0x18] sm:$0x8] %v483_v26  ;;  %v1904_v33 = vld [vmem:[#allocation7] sm:$0xff]  ;;  %v410_v34 = vrot.slane %v2393_v23, 4  ;;  %v491_v37 = vshll.u32 %v1699_v27, 16  ;;  %1970 = vmatpush.bf16.msra.mxu3 %v1905_v10  ;;  %732 = vmatpush.bf16.msra.mxu1 %v1905_v10 }
  0x3f   : > { %v448_v36 = vor.u32 %v447_v25, %v444_v24  ;;  %v494_v38 = vshrl.u32 %v1699_v27, 16  ;;  %v472_v41 = vld [vmem:[#allocation2 + $0x18] sm:$0x7]  ;;  %v500_v42 = vshll.u32 %v1700_v31, 16  ;;  %v504_v43 = vshrl.u32 %v1700_v31, 16  ;;  %v1915_v49 = vld [vmem:[#allocation7 + $0x58] sm:$0xff] }
  0x40   : > { %v457_v39 = vor.u32 %v456_v30, %v453_v29  ;;  %v424_v44 = vsel %vm2400_vm15, %v410_v34, %v423_v19  ;;  %v493_v47 = vrot.slane %v491_v37, 5  ;;  %vm381_vm8 = vcmask 517121   ;;  %vm2440_vm15 = vmor %vm2756_vm10, %vm488_vm11  ;;  %v1914_v62 = vld [vmem:[#allocation7 + $0x50] sm:$0xff]  ;;  %v519_v1 = vld [vmem:[#allocation2 + $0x20] sm:$0xf]  ;;  %s2660_s17 = scalar_lea.vmem [#allocation10], %s1691_s1 }
  0x41   : > { %v449_v45 = vrot.slane %v448_v36, 4  ;;  %v496_v48 = vrot.slane %v494_v38, 4  ;;  %425 = vst [vmem:[#allocation2 + $0x10] sm:$0x3] %v424_v44  ;;  %v502_v52 = vrot.slane %v500_v42, 5  ;;  %v506_v57 = vrot.slane %v504_v43, 4  ;;  %1967 = vmatpush.bf16.msra.mxu2 %v1908_v32  ;;  %662 = vmatpush.bf16.msra.mxu0 %v1908_v32 }
  0x42   : > { %v459_v50 = vrot.slane %v457_v39, 4  ;;  %v466_v51 = vld [vmem:[#allocation2 + $0x10] sm:$0xc]  ;;  %1971 = vmatpush.bf16.msra.mxu3 %v1904_v33  ;;  %vm415_vm14 = vsmask.f32 7942  ;;  %733 = vmatpush.bf16.msra.mxu1 %v1904_v33  ;;  %vm414_vm12 = vcmask 519169  }
  0x43   : > { %v458_v53 = vsel %vm2408_vm5, %v449_v45, %v457_v39  ;;  %v467_v54 = vsel %vm2414_vm3, %v448_v36, %v466_v51  ;;  %v497_v55 = vor.u32 %v496_v48, %v493_v47  ;;  %v507_v63 = vor.u32 %v506_v57, %v502_v52  ;;  %vm426_vm11 = vmand %vm381_vm8, %vm415_vm14  ;;  %v1913_v8 = vld [vmem:[#allocation7 + $0x48] sm:$0xff]  ;;  %v343_v10 = vld [vmem:[%s2366_s13 + $0x4] sm:$0xf]  ;;  %s1944_s11 = sshll.u32 %s2276_s28, 5  ;;  %s1586_s28 = sshll.u32 %s2660_s17, 4  ;;  %s1587_s28 = int_to_ptr.vmem [resolvable:$true] %s1586_s28 }
  0x44   : > { %468 = vst [vmem:[#allocation2 + $0x10] sm:$0xc] %v467_v54  ;;  %v473_v58 = vsel %vm2422_vm4, %v459_v50, %v472_v41  ;;  %vm475_vm5 = vmand %vm430_vm0, %vm2755_vm7  ;;  %v355_v11 = vshrl.u32 %v343_v10, 16  ;;  %vm639_vm3 = vcmask 523264   ;;  %vm336_vm4 = vcmask 516096   ;;  %v1912_v45 = vld [vmem:[#allocation7 + $0x40] sm:$0xff]  ;;  %s1585_s19 = scalar_lea.hbm %s2751_s7, %s1944_s11 }
  0x45   : > { %469 = vst.msk [vmem:[#allocation2 + $0x14] sm:$0xf] %vm366_vm13, %v458_v53  ;;  %v498_v60 = vrot.slane %v497_v55, 4  ;;  %v514_v61 = vld [vmem:[#allocation2 + $0x18] sm:$0x8]  ;;  %825 = vmatpush.bf16.msrb.mxu2 %v1915_v49  ;;  %v508_v3 = vrot.slane %v507_v63, 4  ;;  %vm416_vm10 = vmand %vm414_vm12, %vm415_vm14 }
  0x46   : > { %474 = vst [vmem:[#allocation2 + $0x18] sm:$0x7] %v473_v58  ;;  %v515_v0 = vsel %vm2432_vm6, %v493_v47, %v514_v61  ;;  %v357_v15 = vrot.slane %v355_v11, 7  ;;  %v339_v18 = vld [vmem:[#allocation2] sm:$0x1]  ;;  %v358_v39 = vshll.u32 %v343_v10, 16 }
  0x47   : > { %v503_v2 = vsel %vm2440_vm15, %v498_v60, %v502_v52  ;;  %516 = vst [vmem:[#allocation2 + $0x18] sm:$0x8] %v515_v0  ;;  %v520_v5 = vsel %vm518_vm9, %v508_v3, %v519_v1  ;;  %vm337_vm15 = vsmask.f32 256  ;;  %v374_v21 = vld [vmem:[#allocation2 + $0x8] sm:$0x1] }
  0x48   : > { %517 = vst.msk [vmem:[#allocation2 + $0x1c] sm:$0xf] %vm366_vm13, %v503_v2  ;;  %v427_v4 = vld [vmem:[#allocation2 + $0x10] sm:$0x2]  ;;  %vm338_vm0 = vmand %vm336_vm4, %vm337_vm15  ;;  %v362_v19 = vrot.slane %v357_v15, 4  ;;  %v360_v48 = vor.u32 %v358_v39, %v357_v15  ;;  %s1573_s30 = scalar_lea.sflag [#allocation6], %s2360_s14 }
  0x49   : > { %826 = vmatpush.bf16.msrb.mxu2 %v1914_v62  ;;  %v428_v6 = vsel %vm426_vm11, 0, %v427_v4  ;;  %521 = vst [vmem:[#allocation2 + $0x20] sm:$0xf] %v520_v5  ;;  %v340_v20 = vsel %vm338_vm0, 0, %v339_v18  ;;  %v384_v22 = vld [vmem:[#allocation2 + $0x8] sm:$0x2] }
  0x4a   : > { %429 = vst [vmem:[#allocation2 + $0x10] sm:$0x2] %v428_v6  ;;  %v375_v26 = vsel %vm338_vm0, %v362_v19, %v374_v21  ;;  %v342_v28 = vld [vmem:[%s2366_s13] sm:$0xf]  ;;  %v1695_v29 = vld [vmem:[%s2366_s13 + $0x8] sm:$0xf] }
  0x4b   : > { %341 = vst [vmem:[#allocation2] sm:$0x1] %v340_v20  ;;  %v347_v32 = vshrl.u32 %v342_v28, 16  ;;  %vm575_vm9 = vsmask.f32 7424  ;;  %v393_v33 = vshrl.u32 %v1695_v29, 16 }
  0x4c   : > { %376 = vst [vmem:[#allocation2 + $0x8] sm:$0x1] %v375_v26  ;;  %v396_v34 = vshll.u32 %v1695_v29, 16  ;;  %v350_v38 = vshll.u32 %v342_v28, 16  ;;  %s1588_s13 = sshll.u32 %s1585_s19, 4  ;;  %s2157_s23 = scalar_lea.hbm %s2751_s7, 64  ;;  %s1589_s13 = int_to_ptr.hbm [resolvable:$true] %s1588_s13 }
  0x4d   : > { %v476_v7 = vld [vmem:[#allocation2 + $0x18] sm:$0x4]  ;;  %827 = vmatpush.bf16.msrb.mxu2 %v1913_v8  ;;  %v349_v37 = vrot.slane %v347_v32, 7  ;;  %v395_v41 = vrot.slane %v393_v33, 6  ;;  %s2151_s12 = sshra.s32 %s1589_s13, 4  ;;  %s2152_s12 = int_to_ptr.hbm [resolvable:$true] %s2151_s12 }
  0x4e   : > { %v477_v9 = vsel %vm475_vm5, 0, %v476_v7  ;;  %v398_v42 = vrot.slane %v396_v34, 7  ;;  %vm367_vm5 = vsmask.f32 7938  ;;  %s2153_s18 = scalar_lea.hbm %s2152_s12, 32  ;;  %p2158_p11 = scmp.lt.s32.totalorder %s2152_s12, %s2751_s7 }
  0x4f   : > { %478 = vst [vmem:[#allocation2 + $0x18] sm:$0x4] %v477_v9  ;;  %v352_v44 = vor.u32 %v350_v38, %v349_v37  ;;  %v353_v47 = vrot.slane %v349_v37, 4  ;;  %vm368_vm0 = vmand %vm366_vm13, %vm367_vm5  ;;  %p2154_p1 = scmp.ne.s32.totalorder %s2152_s12, %s2153_s18  ;;  %p2159_p2 = scmp.lt.s32.totalorder %s2157_s23, %s2153_s18 }
  0x50   : > { %v522_v12 = vld [vmem:[#allocation2 + $0x20] sm:$0x8]  ;;  %v399_v52 = vor.u32 %v398_v42, %v395_v41  ;;  %v533_v1 = vld [vmem:[#allocation2 + $0x20] sm:$0x7]  ;;  %v1925_v41 = vld [vmem:[#allocation9 + $0x30] sm:$0xff] }
  0x51   : > { %v2457_v13 = vld [vmem:[#allocation2 + $0x10] sm:$0xff]  ;;  %v523_v14 = vsel %vm2432_vm6, 0, %v522_v12  ;;  %vm383_vm6 = vmand %vm381_vm8, %vm382_vm2  ;;  %vm344_vm8 = vsmask.f32 4368  ;;  %828 = vmatpush.bf16.msrb.mxu2 %v1912_v45  ;;  %p2155_p4 = pnand %p2154_p1, %p2327_p3  ;;  %p2160_p9 = por %p2159_p2, %p2158_p11 }
  0x52   : > { %524 = vst [vmem:[#allocation2 + $0x20] sm:$0x8] %v523_v14  ;;  %v592_v16 = vshll.u32 %v2457_v13, 16  ;;  %v596_v17 = vshrl.u32 %v2457_v13, 16  ;;  %1752 = vmatmul.msk.bf16.vlgmr.msra.gmra.mxu3 %vm639_vm3, %v2457_v13  ;;  %v385_v27 = vsel %vm383_vm6, 0, %v384_v22  ;;  %vm2480_vm11 = vmor %vm337_vm15, %vm344_vm8  ;;  %v400_v56 = vrot.slane %v399_v52, 4 }
  0x53   : > { %386 = vst [vmem:[#allocation2 + $0x8] sm:$0x2] %v385_v27  ;;  %v369_v49 = vld [vmem:[#allocation2] sm:$0xf]  ;;  %v378_v51 = vld [vmem:[#allocation2 + $0x8] sm:$0x1]  ;;  %v361_v53 = vsel %vm2480_vm11, %v353_v47, %v360_v48  ;;  %vm377_vm8 = vmand %vm336_vm4, %vm367_vm5  ;;  %p2156_p8 = pneg %p2155_p4 }
  0x54   : > { %v2471_v25 = vrot.slane %v592_v16, 1  ;;  %vm390_vm6 = vsmask.f32 5392  ;;  %v370_v54 = vsel %vm368_vm0, %v352_v44, %v369_v49  ;;  %v379_v55 = vsel %vm377_vm8, 0, %v378_v51  ;;  %373 = vst.msk [vmem:[#allocation2 + $0x4] sm:$0xf] %vm366_vm13, %v361_v53 }
  0x55   : > { %371 = vst [vmem:[#allocation2] sm:$0xf] %v370_v54  ;;  %vm391_vm7 = vmor %vm382_vm2, %vm390_vm6  ;;  %v909_v44 = vld [vmem:[#allocation3] sm:$0x1]  ;;  %v1924_v49 = vld [vmem:[#allocation9 + $0x28] sm:$0xff]  ;;  %vm993_vm4 = vcmask 1042434   ;;  %p2161_p10 = pnand %p2160_p9, %p2156_p8 }
  0x56   : > { %v2469_v24 = vld [vmem:[#allocation2 + $0x18] sm:$0xff]  ;;  %v598_v30 = vor.u32 %v596_v17, %v2471_v25  ;;  %380 = vst [vmem:[#allocation2 + $0x8] sm:$0x1] %v379_v55  ;;  %v409_v60 = vsel %vm391_vm7, %v400_v56, %v2393_v23  ;;  %v689_v23 = vunpack.c.l.b16 %v533_v1  ;;  %v776_v17 = vrot.slane %v2457_v13, 1  ;;  %v1922_v54 = vld [vmem:[#allocation9 + $0x18] sm:$0xff] }
  0x57   : > { %v600_v31 = vshll.u32 %v2469_v24, 16  ;;  %v604_v58 = vshrl.u32 %v2469_v24, 16  ;;  %420 = vst.msk [vmem:[#allocation2 + $0xc] sm:$0xf] %vm366_vm13, %v409_v60  ;;  %v778_v18 = vrot.slane %v2469_v24, 1  ;;  %vm772_vm7 = vcmask 1046528  }
  0x58   : > { %v690_v10 = vpack.c.b16 %v689_v23, %v689_v23  ;;  %vm945_vm13 = vcmask 1041409   ;;  %v1934_v60 = vld [vmem:[#allocation9 + $0x78] sm:$0xff]  ;;  %v1933_v1 = vld [vmem:[#allocation9 + $0x70] sm:$0xff]  ;;  %vm932_vm0 = vcmask 1043456   ;;  %vm1034_vm8 = vcmask 1043459  }
  0x59   : > { %v602_v35 = vrot.slane %v600_v31, 1  ;;  %v542_v36 = vld [vmem:[#allocation2 + $0x20] sm:$0xf]  ;;  %v779_v22 = vsel %vm772_vm7, %v776_v17, %v778_v18  ;;  %1230 = vmatpush.bf16.msrb.mxu3 %v1934_v60  ;;  %vm933_vm6 = vmand %vm932_vm0, %vm367_vm5 }
  0x5a   : > { %v569_v40 = vunpack.c.l.b16 %v542_v36  ;;  %v417_v57 = vld [vmem:[#allocation2 + $0x8] sm:$0xe] }
  0x5b   : > { %v603_v43 = vsel %vm575_vm9, %v598_v30, %v602_v35  ;;  %v418_v61 = vsel %vm416_vm10, %v399_v52, %v417_v57  ;;  %v606_v62 = vor.u32 %v604_v58, %v602_v35  ;;  %v1958_v19 = vld [vmem:[#allocation2] sm:$0xf0]  ;;  %vm907_vm10 = vcmask 1040384   ;;  %v1921_v57 = vld [vmem:[#allocation9 + $0x10] sm:$0xff] }
  0x5c   : > { %1731 = vmatmul.msk.bf16.vlgmr.msra.gmra.mxu2 %vm639_vm3, %v603_v43  ;;  %v2484_v50 = vpack.c.b16 %v569_v40, %v569_v40  ;;  %419 = vst [vmem:[#allocation2 + $0x8] sm:$0xe] %v418_v61  ;;  %v1946_v0 = vld [vmem:[#allocation2] sm:$0xff]   ;;  %vm2533_vm12 = vmand %vm907_vm10, %vm337_vm15  ;;  %v947_v61 = vld [vmem:[#allocation3 + $0x8] sm:$0x2] }
  0x5d   : > { %v577_v2 = vshrl.u32 %v1946_v0, 16  ;;  %v579_v3 = vshll.u32 %v1946_v0, 16  ;;  %1750 = vmatmul.msk.bf16.vlgmr.msra.gmra.mxu1 %vm639_vm3, %v1946_v0  ;;  %v1959_v20 = vld [vmem:[#allocation2] sm:$0xe]  ;;  %v910_v47 = vsel %vm2533_vm12, 0, %v909_v44  ;;  %v1941_v0 = vld [vmem:[#allocation9 + $0xb0] sm:$0xff]  ;;  %1231 = vmatpush.bf16.msrb.mxu3 %v1933_v1  ;;  %vm994_vm15 = vmand %vm993_vm4, %vm431_vm1 }
  0x5e   : > { %v608_v59 = vshll.u32 %v2484_v50, 16  ;;  %v612_v12 = vshrl.u32 %v2484_v50, 16  ;;  %v1960_v26 = vor.u32 %v1959_v20, %v1958_v19  ;;  %v780_v13 = vrot.slane %v2484_v50, 1  ;;  %v1926_v40 = vld [vmem:[#allocation9 + $0x38] sm:$0xff]  ;;  %911 = vst [vmem:[#allocation3] sm:$0x1] %v910_v47 }
  0x5f   : > { %v581_v6 = vrot.slane %v579_v3, 1  ;;  %1319 = vmatpush.bf16.msrb.mxu0 %v1926_v40  ;;  %v1923_v50 = vld [vmem:[#allocation9 + $0x20] sm:$0xff]  ;;  %v1942_v58 = vld [vmem:[#allocation9 + $0xb8] sm:$0xff]  ;;  %v995_v20 = vld [vmem:[#allocation3 + $0x10] sm:$0x4] }
  0x60   : > { %v610_v63 = vrot.slane %v608_v59, 1  ;;  %v773_v27 = vrot.slane %v1960_v26, 1  ;;  %1435 = vmatpush.bf16.msrb.mxu1 %v1942_v58  ;;  %v1919_v3 = vld [vmem:[#allocation9] sm:$0xff]  ;;  %v1928_v44 = vld [vmem:[#allocation9 + $0x48] sm:$0xff] }
  0x61   : > { %v582_v7 = vor.u32 %v581_v6, %v577_v2 }
  0x62   : > { %1753 = vmatmul.msk.bf16.gmra.mxu3 %vm639_vm3, %v2469_v24  ;;  %v611_v4 = vsel %vm575_vm9, %v606_v62, %v610_v63  ;;  %v614_v15 = vor.u32 %v612_v12, %v610_v63  ;;  %v781_v24 = vsel %vm772_vm7, %v778_v18, %v780_v13  ;;  %v1920_v63 = vld [vmem:[#allocation9 + $0x8] sm:$0xff] }
  0x63   : > { %v1901_v5 = vld [vmem:[#allocation2 + $0x8] sm:$0xff]  ;;  %1320 = vmatpush.bf16.msrb.mxu0 %v1925_v41 }
  0x64   : > { %v584_v8 = vshll.u32 %v1901_v5, 16  ;;  %v588_v14 = vshrl.u32 %v1901_v5, 16  ;;  %v774_v28 = vrot.slane %v1901_v5, 1  ;;  %1436 = vmatpush.bf16.msrb.mxu1 %v1941_v0 }
  0x66   : > { %v586_v9 = vrot.slane %v584_v8, 1  ;;  %v775_v29 = vsel %vm772_vm7, %v773_v27, %v774_v28  ;;  %v777_v30 = vsel %vm772_vm7, %v774_v28, %v776_v17  ;;  %v1932_v8 = vld [vmem:[#allocation9 + $0x68] sm:$0xff] }
  0x67   : > { %1321 = vmatpush.bf16.msrb.mxu0 %v1924_v49  ;;  %1232 = vmatpush.bf16.msrb.mxu3 %v1932_v8 }
  0x68   : > { %v587_v11 = vsel %vm575_vm9, %v582_v7, %v586_v9  ;;  %v590_v16 = vor.u32 %v588_v14, %v586_v9  ;;  %v1931_v14 = vld [vmem:[#allocation9 + $0x60] sm:$0xff] }
  0x69   : > { %1729 = vmatmul.msk.bf16.vlgmr.msra.gmra.mxu0 %vm639_vm3, %v587_v11  ;;  %v1939_v11 = vld [vmem:[#allocation9 + $0xa0] sm:$0xff] }
  0x6a   : > { %v595_v21 = vsel %vm575_vm9, %v590_v16, %v2471_v25  ;;  %v1938_v16 = vld [vmem:[#allocation9 + $0x98] sm:$0xff] }
  0x6b   : > { %1322 = vmatpush.bf16.msrb.mxu0 %v1923_v50  ;;  %1233 = vmatpush.bf16.msrb.mxu3 %v1931_v14  ;;  %v1935_v50 = vld [vmem:[#allocation9 + $0x80] sm:$0xff] }
  0x6c   : > { %1732 = vmatmul.msk.bf16.gmra.mxu2 %vm639_vm3, %v611_v4  ;;  %v1940_v4 = vld [vmem:[#allocation9 + $0xa8] sm:$0xff] }
  0x6d   : > { %1751 = vmatmul.msk.bf16.gmra.mxu1 %vm639_vm3, %v1901_v5  ;;  %v2548_v5 = vld [vmem:[%s2746_s2] ss:$0 sm:$0xff] }
  0x6e   : > { %1437 = vmatpush.bf16.msrb.mxu1 %v1940_v4 }
  0x6f   : > { %1323 = vmatpush.bf16.msrb.mxu0 %v1922_v54 }
  0x72   : > { %1754 = vmatmul.msk.bf16.gmra.mxu3 %vm639_vm3, %v690_v10  ;;  %v2553_v10 = vld [vmem:[%s2747_s3] ss:$0 sm:$0xff]  ;;  %1438 = vmatpush.bf16.msrb.mxu1 %v1939_v11 }
  0x73   : > { %1324 = vmatpush.bf16.msrb.mxu0 %v1921_v57  ;;  %v1927_v57 = vld [vmem:[#allocation9 + $0x40] sm:$0xff] }
  0x76   : > { %1439 = vmatpush.bf16.msrb.mxu1 %v1938_v16 }
  0x77   : > { %1325 = vmatpush.bf16.msrb.mxu0 %v1920_v63 }
  0x79   : > { %1730 = vmatmul.msk.bf16.gmra.mxu0 %vm639_vm3, %v595_v21  ;;  %v1930_v21 = vld [vmem:[#allocation9 + $0x58] sm:$0xff] }
  0x7a   : > { %1234 = vmatpush.bf16.msrb.mxu3 %v1930_v21 }
  0x7b   : > { %1326 = vmatpush.bf16.msrb.mxu0 %v1919_v3 }
  0x7c   : > { %1733 = vmatmul.msk.bf16.gmra.mxu2 %vm639_vm3, %v614_v15 }
  0x8c   : > { %1771 = vmatmul.msk.bf16.vlgmr.msrb.gmra.mxu2 %vm639_vm3, %v775_v29  ;;  %v996_v29 = vsel %vm994_vm15, 0, %v995_v20 }
  0x8d   : > { %997 = vst [vmem:[#allocation3 + $0x10] sm:$0x4] %v996_v29 }
  0x9c   : > { %1772 = vmatmul.msk.bf16.gmra.mxu2 %vm639_vm3, %v777_v30 }
  0xac   : > { %1773 = vmatmul.msk.bf16.gmra.mxu2 %vm639_vm3, %v779_v22 }
  0xbc   : > { %1774 = vmatmul.msk.bf16.gmra.mxu2 %vm639_vm3, %v781_v24 }
  0xcc   : > { %1775 = vmatmul.msk.bf16.gmra.mxu2 %vm639_vm3, %v780_v13  ;;  %vm946_vm3 = vmand %vm945_vm13, %vm382_vm2  ;;  %v1937_v13 = vld [vmem:[#allocation9 + $0x90] sm:$0xff] }
  0xcd   : > { %v948_v62 = vsel %vm946_vm3, 0, %v947_v61  ;;  %1440 = vmatpush.bf16.msrb.mxu1 %v1937_v13  ;;  %vm2786_vm3 = vsmask.f32 3328 }
  0xce   : > { %949 = vst [vmem:[#allocation3 + $0x8] sm:$0x2] %v948_v62  ;;  %vm1035_vm15 = vmand %vm1034_vm8, %vm2786_vm3  ;;  %v938_v62 = vld [vmem:[#allocation3 + $0x8] sm:$0x1] }
  0xd5   : > { %v745_v25 = vpop.f32.mrf.mxu3  ;;  %v980_v16 = vld [vmem:[#allocation3 + $0x8] sm:$0xe] }
  0xda   : > { %v735_v56 = vpop.f32.mrf.mxu1 }
  0xdd   : > { %v747_v31 = vpop.f32.mrf.mxu3 }
  0xdf   : > { %v674_v32 = vpop.f32.mrf.mxu2 }
  0xe0   : > { %v2525_v33 = vadd.f32 %v745_v25, %v674_v32  ;;  %v1929_v25 = vld [vmem:[#allocation9 + $0x50] sm:$0xff] }
  0xe1   : > { %1235 = vmatpush.bf16.msrb.mxu3 %v1929_v25 }
  0xe2   : > { %v737_v23 = vpop.f32.mrf.mxu1 }
  0xe5   : > { %v750_v34 = vpop.f32.mrf.mxu3  ;;  %1236 = vmatpush.bf16.msrb.mxu3 %v1928_v44 }
  0xe6   : > { %v664_v55 = vpop.f32.mrf.mxu0 }
  0xe7   : > { %v676_v35 = vpop.f32.mrf.mxu2  ;;  %v736_v2 = vadd.f32 %v735_v56, %v664_v55  ;;  %v1036_v56 = vld [vmem:[#allocation3 + $0x18] sm:$0x8] }
  0xe8   : > { %v2527_v36 = vadd.f32 %v747_v31, %v676_v35  ;;  %v1037_v61 = vsel %vm1035_vm15, 0, %v1036_v56  ;;  %vm984_vm15 = vcmask 1041408  }
  0xe9   : > { %1038 = vst [vmem:[#allocation3 + $0x18] sm:$0x8] %v1037_v61  ;;  %1237 = vmatpush.bf16.msrb.mxu3 %v1927_v57 }
  0xea   : > { %v740_v28 = vpop.f32.mrf.mxu1 }
  0xed   : > { %v752_v37 = vpop.f32.mrf.mxu3 }
  0xee   : > { %v666_v6 = vpop.f32.mrf.mxu0 }
  0xef   : > { %v679_v38 = vpop.f32.mrf.mxu2  ;;  %v738_v18 = vadd.f32 %v737_v23, %v666_v6 }
  0xf0   : > { %v2529_v39 = vadd.f32 %v750_v34, %v679_v38  ;;  %v1936_v38 = vld [vmem:[#allocation9 + $0x88] sm:$0xff] }
  0xf1   : > { %1441 = vmatpush.bf16.msrb.mxu1 %v1936_v38 }
  0xf2   : > { %v742_v55 = vpop.f32.mrf.mxu1 }
  0xf5   : > { %v755_v42 = vpop.f32.mrf.mxu3  ;;  %1442 = vmatpush.bf16.msrb.mxu1 %v1935_v50 }
  0xf6   : > { %v669_v27 = vpop.f32.mrf.mxu0 }
  0xf7   : > { %v681_v45 = vpop.f32.mrf.mxu2  ;;  %v741_v35 = vadd.f32 %v740_v28, %v669_v27 }
  0xf8   : > { %v2539_v48 = vadd.f32 %v752_v37, %v681_v45  ;;  %v934_v37 = vld [vmem:[#allocation3] sm:$0xf] }
  0xfd   : > { %v757_v51 = vpop.f32.mrf.mxu3 }
  0xfe   : > { %v671_v54 = vpop.f32.mrf.mxu0 }
  0xff   : > { %v684_v52 = vpop.f32.mrf.mxu2  ;;  %v743_v63 = vadd.f32 %v742_v55, %v671_v54  ;;  %v986_v54 = vld [vmem:[#allocation3 + $0x10] sm:$0x3] }
 0x100   : > { %v2541_v53 = vadd.f32 %v755_v42, %v684_v52 }
 0x107   : > { %v686_v59 = vpop.f32.mrf.mxu2 }
 0x10f   : > { %v830_v7 = vpop.f32.mrf.mxu2 }
 0x110   : > { %v854_v9 = vadd.f32 %v830_v7, %v736_v2 }
 0x112   : > { %v867_v12 = vmul.f32 %v2548_v5, %v854_v9 }
 0x114   : > { %v880_v15 = vadd.f32 %v2553_v10, %v867_v12 }
 0x116   : > { %v889_v17 = vmax.f32 %v880_v15, 0.0 }
 0x117   : > { %v832_v19 = vpop.f32.mrf.mxu2 }
 0x118   : > { %v898_v22 = vpack.c.bf16 %v889_v17, %v889_v17  ;;  %v855_v26 = vadd.f32 %v832_v19, %v738_v18 }
 0x11a   : > { %v913_v24 = vshrl.u32 %v898_v22, 16  ;;  %v868_v30 = vmul.f32 %v2548_v5, %v855_v26  ;;  %v916_v32 = vshll.u32 %v898_v22, 16 }
 0x11c   : > { %v915_v31 = vrot.slane %v913_v24, 7  ;;  %v881_v34 = vadd.f32 %v2553_v10, %v868_v30 }
 0x11e   : > { %v918_v40 = vor.u32 %v916_v32, %v915_v31  ;;  %v890_v41 = vmax.f32 %v881_v34, 0.0  ;;  %v919_v0 = vrot.slane %v915_v31, 4 }
 0x11f   : > { %v835_v42 = vpop.f32.mrf.mxu2 }
 0x120   : > { %v935_v45 = vsel %vm933_vm6, %v918_v40, %v934_v37  ;;  %v899_v47 = vpack.c.bf16 %v890_v41, %v890_v41  ;;  %v856_v49 = vadd.f32 %v835_v42, %v741_v35  ;;  %vm978_vm6 = vcmask 1043457  }
 0x121   : > { %936 = vst [vmem:[#allocation3] sm:$0xf] %v935_v45  ;;  %vm979_vm3 = vmand %vm978_vm6, %vm415_vm14  ;;  %vm2787_vm6 = vsmask.f32 7946 }
 0x122   : > { %v921_v51 = vshrl.u32 %v899_v47, 16  ;;  %v869_v52 = vmul.f32 %v2548_v5, %v856_v49  ;;  %v924_v59 = vshll.u32 %v899_v47, 16  ;;  %v1021_v49 = vld [vmem:[#allocation3 + $0x10] sm:$0xc] }
 0x124   : > { %v923_v58 = vrot.slane %v921_v51, 7  ;;  %v882_v60 = vadd.f32 %v2553_v10, %v869_v52 }
 0x126   : > { %v926_v1 = vor.u32 %v924_v59, %v923_v58  ;;  %v928_v2 = vrot.slane %v923_v58, 4  ;;  %v891_v3 = vmax.f32 %v882_v60, 0.0 }
 0x127   : > { %v837_v4 = vpop.f32.mrf.mxu2 }
 0x128   : > { %v927_v6 = vsel %vm2480_vm11, %v919_v0, %v926_v1  ;;  %v939_v23 = vsel %vm2533_vm12, %v928_v2, %v938_v62  ;;  %v900_v7 = vpack.c.bf16 %v891_v3, %v891_v3  ;;  %v857_v8 = vadd.f32 %v837_v4, %v743_v63  ;;  %vm941_vm12 = vmand %vm907_vm10, %vm367_vm5  ;;  %v1962_v51 = vld [vmem:[#allocation3] sm:$0xe] }
 0x129   : > { %937 = vst [vmem:[#allocation3 + $0x4] sm:$0xf] %v927_v6  ;;  %vm1019_vm5 = vcmask 1043458  }
 0x12a   : > { %940 = vst [vmem:[#allocation3 + $0x8] sm:$0x1] %v939_v23  ;;  %v951_v9 = vshrl.u32 %v900_v7, 16  ;;  %v870_v11 = vmul.f32 %v2548_v5, %v857_v8  ;;  %v954_v14 = vshll.u32 %v900_v7, 16 }
 0x12c   : > { %v953_v12 = vrot.slane %v951_v9, 7  ;;  %v883_v15 = vadd.f32 %v2553_v10, %v870_v11 }
 0x12e   : > { %v956_v17 = vor.u32 %v954_v14, %v953_v12  ;;  %v892_v18 = vmax.f32 %v883_v15, 0.0  ;;  %v957_v25 = vrot.slane %v953_v12, 4 }
 0x12f   : > { %v840_v43 = vpop.f32.mrf.mxu2 }
 0x130   : > { %v981_v19 = vsel %vm979_vm3, %v956_v17, %v980_v16  ;;  %v901_v20 = vpack.c.bf16 %v892_v18, %v892_v18  ;;  %v858_v21 = vadd.f32 %v840_v43, %v2525_v33  ;;  %v1950_v22 = vld [vmem:[#allocation3] sm:$0xff]   ;;  %vm2585_vm3 = vmand %vm1019_vm5, %vm2787_vm6  ;;  %vm2790_vm5 = vsmask.f32 7950 }
 0x131   : > { %v942_v26 = vld [vmem:[#allocation3 + $0x8] sm:$0x1]  ;;  %982 = vst [vmem:[#allocation3 + $0x8] sm:$0xe] %v981_v19  ;;  %1327 = vmatmul.bf16.vlgmr.msrb.gmra.mxu0 %v1950_v22  ;;  %v1961_v41 = vld [vmem:[#allocation3] sm:$0xf0]  ;;  %vm2612_vm6 = vmand %vm1034_vm8, %vm2790_vm5 }
 0x132   : > { %v943_v27 = vsel %vm941_vm12, 0, %v942_v26  ;;  %v959_v28 = vshrl.u32 %v901_v20, 16  ;;  %v871_v29 = vmul.f32 %v2548_v5, %v858_v21  ;;  %v962_v24 = vshll.u32 %v901_v20, 16  ;;  %vm985_vm12 = vmand %vm984_vm15, %vm382_vm2  ;;  %v1061_v26 = vld [vmem:[#allocation3 + $0x18] sm:$0x8] }
 0x133   : > { %944 = vst [vmem:[#allocation3 + $0x8] sm:$0x1] %v943_v27  ;;  %v1141_v50 = vshll.u32 %v1950_v22, 16  ;;  %v1963_v56 = vor.u32 %v1962_v51, %v1961_v41  ;;  %v1139_v6 = vshrl.u32 %v1950_v22, 16  ;;  %vm989_vm2 = vmand %vm945_vm13, %vm415_vm14  ;;  %vm1025_vm14 = vcmask 1042432  }
 0x134   : > { %v961_v13 = vrot.slane %v959_v28, 7  ;;  %v884_v30 = vadd.f32 %v2553_v10, %v871_v29  ;;  %vm1026_vm13 = vmand %vm1025_vm14, %vm431_vm1  ;;  %vm2793_vm1 = vsmask.f32 7946 }
 0x135   : > { %v1143_v0 = vrot.slane %v1141_v50, 1  ;;  %v1373_v3 = vrot.slane %v1963_v56, 1  ;;  %vm1030_vm8 = vmand %vm993_vm4, %vm2793_vm1 }
 0x136   : > { %v964_v31 = vor.u32 %v962_v24, %v961_v13  ;;  %v893_v32 = vmax.f32 %v884_v30, 0.0 }
 0x137   : > { %v842_v34 = vpop.f32.mrf.mxu2  ;;  %v1144_v11 = vor.u32 %v1143_v0, %v1139_v6 }
 0x138   : > { %v965_v33 = vsel %vm2480_vm11, %v957_v25, %v964_v31  ;;  %v902_v35 = vpack.c.bf16 %v893_v32, %v893_v32  ;;  %v859_v37 = vadd.f32 %v842_v34, %v2527_v36  ;;  %v966_v36 = vrot.slane %v961_v13, 4  ;;  %v1027_v32 = vld [vmem:[#allocation3 + $0x18] sm:$0x7] }
 0x139   : > { %983 = vst [vmem:[#allocation3 + $0xc] sm:$0xf] %v965_v33 }
 0x13a   : > { %v968_v38 = vshrl.u32 %v902_v35, 16  ;;  %v872_v40 = vmul.f32 %v2548_v5, %v859_v37  ;;  %v971_v44 = vshll.u32 %v902_v35, 16 }
 0x13c   : > { %v970_v42 = vrot.slane %v968_v38, 7  ;;  %v885_v45 = vadd.f32 %v2553_v10, %v872_v40 }
 0x13e   : > { %v973_v52 = vor.u32 %v971_v44, %v970_v42  ;;  %v894_v55 = vmax.f32 %v885_v45, 0.0  ;;  %v998_v14 = vrot.slane %v970_v42, 4 }
 0x13f   : > { %v845_v57 = vpop.f32.mrf.mxu2 }
 0x140   : > { %v974_v58 = vsel %vm2480_vm11, %v966_v36, %v973_v52  ;;  %v1022_v59 = vsel %vm2585_vm3, %v973_v52, %v1021_v49  ;;  %v903_v60 = vpack.c.bf16 %v894_v55, %v894_v55  ;;  %v860_v61 = vadd.f32 %v845_v57, %v2529_v39  ;;  %v2596_v62 = vld [vmem:[#allocation3 + $0x8] sm:$0xff] }
 0x141   : > { %v987_v63 = vsel %vm985_vm12, %v974_v58, %v986_v54  ;;  %1023 = vst [vmem:[#allocation3 + $0x10] sm:$0xc] %v1022_v59  ;;  %1332 = vmatmul.bf16.gmra.mxu0 %v2596_v62  ;;  %v1374_v4 = vrot.slane %v2596_v62, 1  ;;  %v1146_v23 = vshll.u32 %v2596_v62, 16  ;;  %v1150_v36 = vshrl.u32 %v2596_v62, 16 }
 0x142   : > { %988 = vst [vmem:[#allocation3 + $0x10] sm:$0x3] %v987_v63  ;;  %v1000_v1 = vshrl.u32 %v903_v60, 16  ;;  %v873_v2 = vmul.f32 %v2548_v5, %v860_v61  ;;  %v1003_v8 = vshll.u32 %v903_v60, 16  ;;  %vm2794_vm3 = vsmask.f32 3328 }
 0x143   : > { %v1375_v9 = vsel %vm772_vm7, %v1373_v3, %v1374_v4  ;;  %v1148_v12 = vrot.slane %v1146_v23, 1  ;;  %vm1065_vm4 = vmand %vm932_vm0, %vm2794_vm3  ;;  %v1066_v3 = vld [vmem:[#allocation3 + $0x20] sm:$0xf] }
 0x144   : > { %v1002_v7 = vrot.slane %v1000_v1, 7  ;;  %v886_v39 = vadd.f32 %v2553_v10, %v873_v2  ;;  %1443 = vmatmul.bf16.vlgmr.msrb.gmra.mxu1 %v1375_v9 }
 0x145   : > { %v1149_v18 = vsel %vm575_vm9, %v1144_v11, %v1148_v12 }
 0x146   : > { %v1005_v15 = vor.u32 %v1003_v8, %v1002_v7  ;;  %v895_v16 = vmax.f32 %v886_v39, 0.0  ;;  %1238 = vmatmul.bf16.vlgmr.msrb.gmra.mxu3 %v1149_v18  ;;  %v1007_v25 = vrot.slane %v1002_v7, 4 }
 0x147   : > { %v847_v17 = vpop.f32.mrf.mxu2 }
 0x148   : > { %v1006_v43 = vsel %vm2480_vm11, %v998_v14, %v1005_v15  ;;  %v904_v19 = vpack.c.bf16 %v895_v16, %v895_v16  ;;  %v861_v20 = vadd.f32 %v847_v17, %v2539_v48 }
 0x149   : > { %v990_v21 = vld [vmem:[#allocation3 + $0x10] sm:$0x2]  ;;  %1024 = vst [vmem:[#allocation3 + $0x14] sm:$0xf] %v1006_v43 }
 0x14a   : > { %v991_v27 = vsel %vm989_vm2, 0, %v990_v21  ;;  %v1009_v28 = vshrl.u32 %v904_v19, 16  ;;  %v1012_v29 = vshll.u32 %v904_v19, 16  ;;  %v874_v13 = vmul.f32 %v2548_v5, %v861_v20 }
 0x14b   : > { %992 = vst [vmem:[#allocation3 + $0x10] sm:$0x2] %v991_v27 }
 0x14c   : > { %v1011_v24 = vrot.slane %v1009_v28, 7  ;;  %v1062_v48 = vsel %vm2612_vm6, %v1012_v29, %v1061_v26  ;;  %v887_v30 = vadd.f32 %v2553_v10, %v874_v13 }
 0x14d   : > { %1063 = vst [vmem:[#allocation3 + $0x18] sm:$0x8] %v1062_v48 }
 0x14e   : > { %v1014_v31 = vor.u32 %v1012_v29, %v1011_v24  ;;  %v896_v34 = vmax.f32 %v887_v30, 0.0  ;;  %v1039_v52 = vrot.slane %v1011_v24, 4 }
 0x14f   : > { %v850_v33 = vpop.f32.mrf.mxu2 }
 0x150   : > { %v1015_v35 = vsel %vm2480_vm11, %v1007_v25, %v1014_v31  ;;  %v905_v37 = vpack.c.bf16 %v896_v34, %v896_v34  ;;  %v862_v38 = vadd.f32 %v850_v33, %v2541_v53 }
 0x151   : > { %v1028_v40 = vsel %vm1026_vm13, %v1015_v35, %v1027_v32 }
 0x152   : > { %1029 = vst [vmem:[#allocation3 + $0x18] sm:$0x7] %v1028_v40  ;;  %v1041_v41 = vshrl.u32 %v905_v37, 16  ;;  %v875_v42 = vmul.f32 %v2548_v5, %v862_v38  ;;  %v1917_v44 = vld [vmem:[#allocation3 + $0x10] sm:$0xff]  ;;  %v1044_v45 = vshll.u32 %v905_v37, 16  ;;  %v1152_v5 = vor.u32 %v1150_v36, %v1148_v12 }
 0x153   : > { %1337 = vmatmul.bf16.gmra.mxu0 %v1917_v44  ;;  %v1376_v50 = vrot.slane %v1917_v44, 1  ;;  %v1154_v51 = vshll.u32 %v1917_v44, 16  ;;  %v1158_v8 = vshrl.u32 %v1917_v44, 16  ;;  %v2647_v40 = vld [vmem:[%s2749_s5] ss:$0 sm:$0xff] }
 0x154   : > { %v1043_v47 = vrot.slane %v1041_v41, 7  ;;  %v888_v49 = vadd.f32 %v2553_v10, %v875_v42 }
 0x155   : > { %v1377_v53 = vsel %vm772_vm7, %v1374_v4, %v1376_v50  ;;  %v1156_v57 = vrot.slane %v1154_v51, 1 }
 0x156   : > { %v1046_v54 = vor.u32 %v1044_v45, %v1043_v47  ;;  %v897_v55 = vmax.f32 %v888_v49, 0.0  ;;  %1448 = vmatmul.bf16.gmra.mxu1 %v1377_v53  ;;  %v1048_v1 = vrot.slane %v1043_v47, 4  ;;  %v2653_v45 = vld [vmem:[%s2750_s6] ss:$0 sm:$0xff] }
 0x157   : > { %v852_v56 = vpop.f32.mrf.mxu2  ;;  %v1157_v60 = vsel %vm575_vm9, %v1152_v5, %v1156_v57  ;;  %v1160_v11 = vor.u32 %v1158_v8, %v1156_v57 }
 0x158   : > { %v1047_v10 = vsel %vm2480_vm11, %v1039_v52, %v1046_v54  ;;  %v906_v58 = vpack.c.bf16 %v897_v55, %v897_v55  ;;  %1243 = vmatmul.bf16.gmra.mxu3 %v1157_v60 }
 0x159   : > { %v1031_v59 = vld [vmem:[#allocation3 + $0x18] sm:$0x4]  ;;  %1064 = vst [vmem:[#allocation3 + $0x1c] sm:$0xf] %v1047_v10 }
 0x15a   : > { %v1032_v61 = vsel %vm1030_vm8, 0, %v1031_v59  ;;  %v1050_v62 = vshrl.u32 %v906_v58, 16  ;;  %v1053_v0 = vshll.u32 %v906_v58, 16 }
 0x15b   : > { %1033 = vst [vmem:[#allocation3 + $0x18] sm:$0x4] %v1032_v61 }
 0x15c   : > { %v1052_v63 = vrot.slane %v1050_v62, 7 }
 0x15e   : > { %v1055_v2 = vor.u32 %v1053_v0, %v1052_v63 }
 0x160   : > { %v1056_v4 = vsel %vm2480_vm11, %v1048_v1, %v1055_v2 }
 0x161   : > { %v1067_v6 = vsel %vm1065_vm4, %v1056_v4, %v1066_v3 }
 0x162   : > { %1068 = vst [vmem:[#allocation3 + $0x20] sm:$0xf] %v1067_v6  ;;  %v1918_v23 = vld [vmem:[#allocation3 + $0x18] sm:$0xff] }
 0x163   : > { %1342 = vmatmul.bf16.gmra.mxu0 %v1918_v23  ;;  %v1378_v7 = vrot.slane %v1918_v23, 1  ;;  %v1162_v39 = vshll.u32 %v1918_v23, 16  ;;  %v1166_v26 = vshrl.u32 %v1918_v23, 16 }
 0x165   : > { %v1379_v9 = vsel %vm772_vm7, %v1376_v50, %v1378_v7  ;;  %v1164_v12 = vrot.slane %v1162_v39, 1 }
 0x166   : > { %1453 = vmatmul.bf16.gmra.mxu1 %v1379_v9 }
 0x167   : > { %v1165_v14 = vsel %vm575_vm9, %v1160_v11, %v1164_v12  ;;  %v1168_v29 = vor.u32 %v1166_v26, %v1164_v12 }
 0x168   : > { %1248 = vmatmul.bf16.gmra.mxu3 %v1165_v14 }
 0x169   : > { %v1069_v15 = vld [vmem:[#allocation3 + $0x20] sm:$0x8]  ;;  %v1080_v46 = vld [vmem:[#allocation3 + $0x20] sm:$0x7] }
 0x16a   : > { %v1070_v16 = vsel %vm2612_vm6, 0, %v1069_v15  ;;  %v1264_v17 = vunpack.c.l.b16 %v1080_v46 }
 0x16b   : > { %1071 = vst [vmem:[#allocation3 + $0x20] sm:$0x8] %v1070_v16 }
 0x16c   : > { %v1265_v18 = vpack.c.b16 %v1264_v17, %v1264_v17 }
 0x172   : > { %v1097_v43 = vld [vmem:[#allocation3 + $0x20] sm:$0xf] }
 0x173   : > { %v1132_v19 = vunpack.c.l.b16 %v1097_v43  ;;  %1347 = vmatmul.bf16.gmra.mxu0 %v1265_v18 }
 0x175   : > { %v1137_v20 = vpack.c.b16 %v1132_v19, %v1132_v19 }
 0x177   : > { %v1380_v21 = vrot.slane %v1137_v20, 1  ;;  %v1170_v27 = vshll.u32 %v1137_v20, 16  ;;  %v1174_v24 = vshrl.u32 %v1137_v20, 16 }
 0x179   : > { %v1381_v28 = vsel %vm772_vm7, %v1378_v7, %v1380_v21  ;;  %v1172_v13 = vrot.slane %v1170_v27, 1  ;;  %vm1540_vm7 = vcmask 1045508  }
 0x17a   : > { %1458 = vmatmul.bf16.gmra.mxu1 %v1381_v28  ;;  %vm2683_vm0 = vmor %vm984_vm15, %vm1540_vm7  ;;  %vm1558_vm15 = vcmask 1044484  }
 0x17b   : > { %v1173_v22 = vsel %vm575_vm9, %v1168_v29, %v1172_v13  ;;  %v1176_v48 = vor.u32 %v1174_v24, %v1172_v13  ;;  %vm1522_vm9 = vcmask 1046532   ;;  %vm2698_vm12 = vmor %vm907_vm10, %vm1558_vm15 }
 0x17c   : > { %1253 = vmatmul.bf16.gmra.mxu3 %v1173_v22  ;;  %vm2668_vm11 = vmor %vm1025_vm14, %vm1522_vm9 }
 0x18a   : > { %1463 = vmatmul.bf16.gmra.mxu1 %v1380_v21 }
 0x18c   : > { %1258 = vmatmul.bf16.gmra.mxu3 %v1176_v48 }
 0x1ae   : > { %v1328_v30 = vpop.f32.mrf.mxu0 }
 0x1b6   : > { %v1330_v25 = vpop.f32.mrf.mxu0 }
 0x1be   : > { %v1333_v31 = vpop.f32.mrf.mxu0 }
 0x1c1   : > { %v1444_v32 = vpop.f32.mrf.mxu1 }
 0x1c6   : > { %v1335_v34 = vpop.f32.mrf.mxu0 }
 0x1c9   : > { %v1239_v33 = vpop.f32.mrf.mxu3  ;;  %v1446_v37 = vpop.f32.mrf.mxu1 }
 0x1ca   : > { %v1329_v35 = vadd.f32 %v1328_v30, %v1239_v33 }
 0x1cc   : > { %v1468_v38 = vadd.f32 %v1444_v32, %v1329_v35 }
 0x1ce   : > { %v1481_v44 = vmul.f32 %v2647_v40, %v1468_v38 }
 0x1d0   : > { %v1338_v41 = vpop.f32.mrf.mxu0  ;;  %v1494_v51 = vadd.f32 %v2653_v45, %v1481_v44 }
 0x1d1   : > { %v1241_v42 = vpop.f32.mrf.mxu3 }
 0x1d2   : > { %v1331_v47 = vadd.f32 %v1330_v25, %v1241_v42  ;;  %v1503_v55 = vmax.f32 %v1494_v51, 0.0 }
 0x1d3   : > { %v1449_v49 = vpop.f32.mrf.mxu1 }
 0x1d4   : > { %v1469_v50 = vadd.f32 %v1446_v37, %v1331_v47 }
 0x1d6   : > { %v1482_v36 = vmul.f32 %v2647_v40, %v1469_v50 }
 0x1d8   : > { %v1340_v52 = vpop.f32.mrf.mxu0  ;;  %v1495_v54 = vadd.f32 %v2653_v45, %v1482_v36 }
 0x1da   : > { %v1504_v53 = vmax.f32 %v1495_v54, 0.0 }
 0x1db   : > { %v1451_v56 = vpop.f32.mrf.mxu1  ;;  %v1244_v5 = vpop.f32.mrf.mxu3 }
 0x1dc   : > { %v1956_v57 = vpack.c.bf16 %v1504_v53, %v1503_v55  ;;  %v1334_v10 = vadd.f32 %v1333_v31, %v1244_v5 }
 0x1de   : > { %1957 = vst [vmem:[%s2660_s17] sm:$0xff] %v1956_v57   ;;  %v1470_v58 = vadd.f32 %v1449_v49, %v1334_v10 }
 0x1e0   : > { %v1343_v59 = vpop.f32.mrf.mxu0  ;;  %v1483_v60 = vmul.f32 %v2647_v40, %v1470_v58 }
 0x1e2   : > { %v1496_v63 = vadd.f32 %v2653_v45, %v1483_v60 }
 0x1e3   : > { %v1246_v61 = vpop.f32.mrf.mxu3  ;;  %v1454_v62 = vpop.f32.mrf.mxu1 }
 0x1e4   : > { %v1336_v0 = vadd.f32 %v1335_v34, %v1246_v61  ;;  %v1505_v3 = vmax.f32 %v1496_v63, 0.0 }
 0x1e6   : > { %v1471_v1 = vadd.f32 %v1451_v56, %v1336_v0  ;;  %v1516_v7 = vpack.c.bf16 %v1505_v3, %v1505_v3 }
 0x1e8   : > { %v1345_v2 = vpop.f32.mrf.mxu0  ;;  %v1484_v4 = vmul.f32 %v2647_v40, %v1471_v1  ;;  %v1884_v16 = vrot.slane %v1516_v7, 9 }
 0x1ea   : > { %v1497_v6 = vadd.f32 %v2653_v45, %v1484_v4 }
 0x1eb   : > { %v1249_v23 = vpop.f32.mrf.mxu3  ;;  %v1456_v9 = vpop.f32.mrf.mxu1 }
 0x1ec   : > { %v1506_v8 = vmax.f32 %v1497_v6, 0.0  ;;  %v1339_v39 = vadd.f32 %v1338_v41, %v1249_v23 }
 0x1ee   : > { %v1517_v11 = vpack.c.bf16 %v1506_v8, %v1506_v8  ;;  %v1472_v12 = vadd.f32 %v1454_v62, %v1339_v39 }
 0x1f0   : > { %v1348_v15 = vpop.f32.mrf.mxu0  ;;  %v1526_v46 = vrot.slane %v1517_v11, 5  ;;  %v1485_v17 = vmul.f32 %v2647_v40, %v1472_v12 }
 0x1f2   : > { %v1527_v18 = vsel %vm2668_vm11, %v1884_v16, %v1526_v46  ;;  %v1498_v43 = vadd.f32 %v2653_v45, %v1485_v17  ;;  %v1528_v13 = vrot.slane %v1526_v46, 4 }
 0x1f3   : > { %1885 = vst [vmem:[%s2660_s17 + $0x8] sm:$0xf] %v1527_v18  ;;  %v1251_v19 = vpop.f32.mrf.mxu3 }
 0x1f4   : > { %v1507_v20 = vmax.f32 %v1498_v43, 0.0  ;;  %v1341_v21 = vadd.f32 %v1340_v52, %v1251_v19 }
 0x1f6   : > { %v1518_v27 = vpack.c.bf16 %v1507_v20, %v1507_v20  ;;  %v1473_v28 = vadd.f32 %v1456_v9, %v1341_v21 }
 0x1f7   : > { %v1459_v26 = vpop.f32.mrf.mxu1 }
 0x1f8   : > { %v1350_v29 = vpop.f32.mrf.mxu0  ;;  %v1529_v22 = vrot.slane %v1518_v27, 5  ;;  %v1486_v24 = vmul.f32 %v2647_v40, %v1473_v28  ;;  %v1887_v37 = vrot.slane %v1518_v27, 10 }
 0x1fa   : > { %v1530_v48 = vsel %vm2668_vm11, %v1528_v13, %v1529_v22  ;;  %v1499_v30 = vadd.f32 %v2653_v45, %v1486_v24 }
 0x1fb   : > { %1886 = vst [vmem:[%s2660_s17 + $0xc] sm:$0xf] %v1530_v48 }
 0x1fc   : > { %v1508_v25 = vmax.f32 %v1499_v30, 0.0 }
 0x1fe   : > { %v1536_v34 = vpack.c.bf16 %v1508_v25, %v1508_v25 }
 0x1ff   : > { %v1254_v31 = vpop.f32.mrf.mxu3  ;;  %v1461_v32 = vpop.f32.mrf.mxu1 }
 0x200   : > { %v1344_v33 = vadd.f32 %v1343_v59, %v1254_v31  ;;  %v1544_v38 = vrot.slane %v1536_v34, 6 }
 0x202   : > { %v1474_v41 = vadd.f32 %v1459_v26, %v1344_v33  ;;  %v1545_v42 = vsel %vm2683_vm0, %v1887_v37, %v1544_v38  ;;  %v1546_v55 = vrot.slane %v1544_v38, 4 }
 0x203   : > { %1888 = vst [vmem:[%s2660_s17 + $0x10] sm:$0xf] %v1545_v42 }
 0x204   : > { %v1487_v44 = vmul.f32 %v2647_v40, %v1474_v41 }
 0x206   : > { %v1500_v47 = vadd.f32 %v2653_v45, %v1487_v44 }
 0x207   : > { %v1256_v49 = vpop.f32.mrf.mxu3  ;;  %v1464_v50 = vpop.f32.mrf.mxu1 }
 0x208   : > { %v1509_v51 = vmax.f32 %v1500_v47, 0.0  ;;  %v1346_v36 = vadd.f32 %v1345_v2, %v1256_v49 }
 0x20a   : > { %v1537_v52 = vpack.c.bf16 %v1509_v51, %v1509_v51  ;;  %v1475_v54 = vadd.f32 %v1461_v32, %v1346_v36 }
 0x20c   : > { %v1547_v53 = vrot.slane %v1537_v52, 6  ;;  %v1488_v56 = vmul.f32 %v2647_v40, %v1475_v54  ;;  %v1890_v0 = vrot.slane %v1537_v52, 11 }
 0x20e   : > { %v1548_v5 = vsel %vm2683_vm0, %v1546_v55, %v1547_v53  ;;  %v1501_v57 = vadd.f32 %v2653_v45, %v1488_v56 }
 0x20f   : > { %1889 = vst [vmem:[%s2660_s17 + $0x14] sm:$0xf] %v1548_v5  ;;  %v1259_v10 = vpop.f32.mrf.mxu3  ;;  %v1466_v58 = vpop.f32.mrf.mxu1 }
 0x210   : > { %v1510_v59 = vmax.f32 %v1501_v57, 0.0  ;;  %v1349_v60 = vadd.f32 %v1348_v15, %v1259_v10 }
 0x212   : > { %v1554_v61 = vpack.c.bf16 %v1510_v59, %v1510_v59  ;;  %v1476_v62 = vadd.f32 %v1464_v50, %v1349_v60 }
 0x214   : > { %v1562_v1 = vrot.slane %v1554_v61, 7  ;;  %v1489_v2 = vmul.f32 %v2647_v40, %v1476_v62 }
 0x216   : > { %v1563_v3 = vsel %vm2698_vm12, %v1890_v0, %v1562_v1  ;;  %v1502_v4 = vadd.f32 %v2653_v45, %v1489_v2  ;;  %v1564_v8 = vrot.slane %v1562_v1, 4 }
 0x217   : > { %1891 = vst [vmem:[%s2660_s17 + $0x18] sm:$0xf] %v1563_v3  ;;  %v1261_v6 = vpop.f32.mrf.mxu3 }
 0x218   : > { %v1511_v23 = vmax.f32 %v1502_v4, 0.0 }
 0x21a   : > { %v1555_v7 = vpack.c.bf16 %v1511_v23, %v1511_v23 }
 0x21c   : > { %v1565_v39 = vrot.slane %v1555_v7, 7 }
 0x21e   : > { %v1566_v40 = vsel %vm2698_vm12, %v1564_v8, %v1565_v39 }
 0x21f   : > { %1892 = vst [vmem:[%s2660_s17 + $0x1c] sm:$0xf] %v1566_v40 }
 0x220   : > { %2164 = shalt.err (!%p2161_p10)
}
 0x221   : > { %s2213_s14 = smov 64   ;;  %s2214_s17 = smov 4  }
 0x222   : > { %1982 = dma.vmem_to_hbm [thread:$0]  (%p2327_p3), %s1587_s28, 512, %s1589_s13, %s1573_s30, %s2213_s14, %s2213_s14, %s2214_s17  }
 0x223 PF: > { %s1603_s11 = sand.u32 1, %s2195_s24   ;;  %p2801_p12 = scmp.ge.s32.totalorder %s2207_s27, 2 }
 0x224   : > { %s1604_s20 = scalar_lea.sflag [#allocation6], %s1603_s11 }
 0x225   : > { %p1996_p13 = pnand %p2801_p12, %p2290_p6 }
 0x227   : > { %p1997_p0 = pneg %p1996_p13 }
 0x229   : > { %2190 = dma.done.wait (%p1997_p0), %s1604_s20, 512  }
 0x22a   : > { %2192 = vsyncadd (%p1997_p0), %s1604_s20, 4294966784  ;;  %p21_p5 = scmp.ge.s32.totalorder %s2317_s22, 4   ;;  %s2802_s24 = smov %s2199_s25 }
 0x22b   : > { %s2803_s25 = smov %s2203_s26  ;;  %s2804_s26 = smov %s2333_s10 }
 0x22c   : > { %s2805_s27 = smov %s2317_s22  ;;  %23 = sbr.rel (!%p21_p5) target bundleno = 8 (0x8), region = 111 }
 0x231   :  { %1610 = vsyncpa [#allocation5], 1 }
 0x232   :  { %1612 = vsyncpa [#allocation5 + $0x1], 1 }
 0x233   :  { %1613 = vsyncpa [#allocation8], 1 }
 0x234   :  { %1614 = vsyncpa [#allocation6], 1 }
 0x235   :  { %1616 = vsyncpa [#allocation6 + $0x1], 1 }

</bundles_post_ra>
